<compile_context>
chip_gen: v7x
topology: tpu7x:2x2x1
jax: 0.10.0
libtpu: 0.0.40
codegen_flags: <defaults>
</compile_context>

<pallas_src>
import math
from dataclasses import dataclass

import jax
import jax.numpy as jnp
from jax import lax
from jax.experimental import pallas as pl
from jax.experimental.pallas import tpu as pltpu

_BF16 = jnp.bfloat16


# ------------------------------ tiling helper -------------------------------

def _pick_tile(dim, pref, gran):
    """Largest tile <= pref that is a multiple of `gran` and divides `dim`;
    falls back to the full dimension (always a legal BlockSpec block)."""
    if dim <= pref:
        return dim
    t = (pref // gran) * gran
    while t >= gran:
        if dim % t == 0:
            return t
        t -= gran
    return dim


# ------------------------------ matmul kernels ------------------------------

def _matmul_kernel(x_ref, w_ref, b_ref, o_ref, acc_ref):
    @pl.when(pl.program_id(2) == 0)
    def _():
        acc_ref[...] = jnp.zeros_like(acc_ref)

    acc_ref[...] += jnp.dot(x_ref[...].astype(_BF16), w_ref[...],
                            preferred_element_type=jnp.float32)

    @pl.when(pl.program_id(2) == pl.num_programs(2) - 1)
    def _():
        o_ref[...] = (acc_ref[...] + b_ref[...]).astype(o_ref.dtype)


def _matmul_res_kernel(x_ref, w_ref, b_ref, r_ref, o_ref, acc_ref):
    @pl.when(pl.program_id(2) == 0)
    def _():
        acc_ref[...] = jnp.zeros_like(acc_ref)

    acc_ref[...] += jnp.dot(x_ref[...].astype(_BF16), w_ref[...],
                            preferred_element_type=jnp.float32)

    @pl.when(pl.program_id(2) == pl.num_programs(2) - 1)
    def _():
        # bias + residual fused into the flush (saves an HBM round trip)
        o_ref[...] = (acc_ref[...] + b_ref[...] + r_ref[...]).astype(o_ref.dtype)


def linear(x2d, w, b=None, residual=None, *, tm=256, tn=256, tk=512):
    """x2d: (M, K) f32; w: (K, N) bf16; b: (N,) f32 or None; residual: (M, N)."""
    M, K = x2d.shape
    _, N = w.shape
    tm = _pick_tile(M, tm, 8)
    tn = _pick_tile(N, tn, 128)
    tk = _pick_tile(K, tk, 128)
    if b is None:
        b = jnp.zeros((N,), jnp.float32)
    b2 = b.reshape(1, N).astype(jnp.float32)
    grid = (M // tm, N // tn, K // tk)
    x_spec = pl.BlockSpec((tm, tk), lambda i, j, k: (i, k))
    w_spec = pl.BlockSpec((tk, tn), lambda i, j, k: (k, j))
    b_spec = pl.BlockSpec((1, tn), lambda i, j, k: (0, j))
    o_spec = pl.BlockSpec((tm, tn), lambda i, j, k: (i, j))
    params = pltpu.CompilerParams(
        dimension_semantics=("parallel", "parallel", "arbitrary"))
    scratch = [pltpu.VMEM((tm, tn), jnp.float32)]
    out_shape = jax.ShapeDtypeStruct((M, N), jnp.float32)
    if residual is None:
        return pl.pallas_call(
            _matmul_kernel, out_shape=out_shape, grid=grid,
            in_specs=[x_spec, w_spec, b_spec], out_specs=o_spec,
            scratch_shapes=scratch, compiler_params=params,
        )(x2d, w, b2)
    r_spec = pl.BlockSpec((tm, tn), lambda i, j, k: (i, j))
    return pl.pallas_call(
        _matmul_res_kernel, out_shape=out_shape, grid=grid,
        in_specs=[x_spec, w_spec, b_spec, r_spec], out_specs=o_spec,
        scratch_shapes=scratch, compiler_params=params,
    )(x2d, w, b2, residual)


# --------------------- fused LayerNorm + matmul (ln1->qkv) -------------------

def _ln_matmul_kernel(x_ref, g_ref, beta_ref, w_ref, b_ref, o_ref):
    x = x_ref[...]
    mu = jnp.mean(x, axis=-1, keepdims=True)
    var = jnp.mean(jnp.square(x - mu), axis=-1, keepdims=True)
    xn = (x - mu) * lax.rsqrt(var + 1e-5) * g_ref[...] + beta_ref[...]
    o_ref[...] = (jnp.dot(xn.astype(_BF16), w_ref[...],
                          preferred_element_type=jnp.float32)
                  + b_ref[...]).astype(o_ref.dtype)


def ln_linear(x2d, gamma, beta, w, b, *, tm=256, tn=256):
    """Fused LayerNorm (over K) + matmul + bias; K kept whole for LN stats."""
    M, K = x2d.shape
    _, N = w.shape
    tm = _pick_tile(M, tm, 8)
    tn = _pick_tile(N, tn, 128)
    return pl.pallas_call(
        _ln_matmul_kernel,
        out_shape=jax.ShapeDtypeStruct((M, N), jnp.float32),
        grid=(M // tm, N // tn),
        in_specs=[pl.BlockSpec((tm, K), lambda i, j: (i, 0)),
                  pl.BlockSpec((1, K), lambda i, j: (0, 0)),
                  pl.BlockSpec((1, K), lambda i, j: (0, 0)),
                  pl.BlockSpec((K, tn), lambda i, j: (0, j)),
                  pl.BlockSpec((1, tn), lambda i, j: (0, j))],
        out_specs=pl.BlockSpec((tm, tn), lambda i, j: (i, j)),
        compiler_params=pltpu.CompilerParams(
            dimension_semantics=("parallel", "parallel")),
    )(x2d, gamma.reshape(1, K), beta.reshape(1, K), w, b.reshape(1, N))


# ----------------------------- layernorm kernel -----------------------------

def _layernorm_kernel(x_ref, g_ref, b_ref, o_ref):
    x = x_ref[...]
    mu = jnp.mean(x, axis=-1, keepdims=True)
    var = jnp.mean(jnp.square(x - mu), axis=-1, keepdims=True)
    o_ref[...] = (x - mu) * lax.rsqrt(var + 1e-5) * g_ref[...] + b_ref[...]


def layernorm(x2d, gamma, beta, *, tm=256):
    M, D = x2d.shape
    tm = _pick_tile(M, tm, 8)
    return pl.pallas_call(
        _layernorm_kernel,
        out_shape=jax.ShapeDtypeStruct((M, D), jnp.float32),
        grid=(M // tm,),
        in_specs=[pl.BlockSpec((tm, D), lambda i: (i, 0)),
                  pl.BlockSpec((1, D), lambda i: (0, 0)),
                  pl.BlockSpec((1, D), lambda i: (0, 0))],
        out_specs=pl.BlockSpec((tm, D), lambda i: (i, 0)),
        compiler_params=pltpu.CompilerParams(dimension_semantics=("parallel",)),
    )(x2d, gamma.reshape(1, D), beta.reshape(1, D))


# ------------------------ flash-style causal attention -----------------------

def _flash_kernel(q_ref, k_ref, v_ref, o_ref, m_ref, l_ref, acc_ref):
    qi = pl.program_id(2)
    ki = pl.program_id(3)
    tq = q_ref.shape[2]
    tk = k_ref.shape[2]
    hd = q_ref.shape[3]
    sm_scale = 1.0 / math.sqrt(hd)

    @pl.when(ki == 0)
    def _():
        m_ref[...] = jnp.full(m_ref.shape, -1e30, jnp.float32)
        l_ref[...] = jnp.zeros_like(l_ref)
        acc_ref[...] = jnp.zeros_like(acc_ref)

    # Skip kv tiles entirely above the causal diagonal.
    @pl.when(ki * tk < (qi + 1) * tq)
    def _():
        q = (q_ref[0, 0] * sm_scale).astype(_BF16)       # scale folded into q
        k = k_ref[0, 0].astype(_BF16)
        v = v_ref[0, 0].astype(_BF16)
        s = lax.dot_general(q, k, (((1,), (1,)), ((), ())),
                            preferred_element_type=jnp.float32)   # (tq, tk)
        row = qi * tq + lax.broadcasted_iota(jnp.int32, (tq, tk), 0)
        col = ki * tk + lax.broadcasted_iota(jnp.int32, (tq, tk), 1)
        s = jnp.where(col <= row, s, -1e30)
        m_prev = m_ref[...]
        m_new = jnp.maximum(m_prev, jnp.max(s, axis=-1, keepdims=True))
        alpha = jnp.exp(m_prev - m_new)
        p = jnp.exp(s - m_new)
        l_ref[...] = alpha * l_ref[...] + jnp.sum(p, axis=-1, keepdims=True)
        acc_ref[...] = alpha * acc_ref[...] + jnp.dot(
            p.astype(_BF16), v, preferred_element_type=jnp.float32)
        m_ref[...] = m_new

    @pl.when(ki == pl.num_programs(3) - 1)
    def _():
        o_ref[0, 0] = (acc_ref[...] *
                       pl.reciprocal(l_ref[...], approx=True)).astype(o_ref.dtype)


def flash_attention(q, k, v, *, tq=128):
    B, H, T, hd = q.shape
    tq = _pick_tile(T, tq, 8)
    tk = tq
    q_spec = pl.BlockSpec((1, 1, tq, hd), lambda b, h, i, j: (b, h, i, 0))
    kv_spec = pl.BlockSpec((1, 1, tk, hd), lambda b, h, i, j: (b, h, j, 0))
    return pl.pallas_call(
        _flash_kernel,
        out_shape=jax.ShapeDtypeStruct((B, H, T, hd), jnp.float32),
        grid=(B, H, T // tq, T // tk),
        in_specs=[q_spec, kv_spec, kv_spec],
        out_specs=q_spec,
        scratch_shapes=[pltpu.VMEM((tq, 1), jnp.float32),
                        pltpu.VMEM((tq, 1), jnp.float32),
                        pltpu.VMEM((tq, hd), jnp.float32)],
        compiler_params=pltpu.CompilerParams(
            dimension_semantics=("parallel", "parallel", "parallel", "arbitrary")),
    )(q, k, v)


# ------------------------------- MoE experts ---------------------------------

def _moe_kernel(x_ref, g_ref, r_ref, w1_ref, b1_ref, w2_ref, b2_ref,
                wp_ref, bp_ref, o_ref, yacc_ref, eacc_ref):
    e = pl.program_id(1)
    h = pl.program_id(2)
    n_e = pl.num_programs(1)
    n_h = pl.num_programs(2)

    @pl.when(jnp.logical_and(e == 0, h == 0))
    def _():
        yacc_ref[...] = r_ref[...]              # residual fused into the MoE output

    @pl.when(h == 0)
    def _():
        eacc_ref[...] = jnp.zeros_like(eacc_ref)

    x = x_ref[...].astype(_BF16)                                         # (tn, D)
    h1 = jnp.dot(x, w1_ref[0], preferred_element_type=jnp.float32) + b1_ref[0]
    h2 = jnp.dot(x, w2_ref[0], preferred_element_type=jnp.float32) + b2_ref[0]
    act = (h1 * (h2 * jax.nn.sigmoid(h2))).astype(_BF16)                 # SwiGLU
    eacc_ref[...] += jnp.dot(act, wp_ref[0], preferred_element_type=jnp.float32)

    @pl.when(h == n_h - 1)
    def _():
        gate = g_ref[...]                                    # (tn, E) lane-dense
        col = lax.broadcasted_iota(jnp.int32, gate.shape, 1)
        ge = jnp.sum(jnp.where(col == e, gate, 0.0), axis=1, keepdims=True)
        yacc_ref[...] += ge * (eacc_ref[...] + bp_ref[0])

    @pl.when(jnp.logical_and(e == n_e - 1, h == n_h - 1))
    def _():
        o_ref[...] = yacc_ref[...].astype(o_ref.dtype)


def moe_experts(h2d, gate_w, residual, p, *, tn=256, th=512):
    # TODO(synk): replace the dense expert sweep with a routed/grouped matmul
    # using pltpu.PrefetchScalarGridSpec group offsets (each expert only sees
    # its top-k-routed tokens); currently unrouted tokens are zeroed by the
    # gate weight, which wastes E/k of the MXU FLOPs.
    N, D = h2d.shape
    E, _, H = p["w1"].shape
    tn = _pick_tile(N, tn, 8)
    th = _pick_tile(H, th, 128)
    return pl.pallas_call(
        _moe_kernel,
        out_shape=jax.ShapeDtypeStruct((N, D), jnp.float32),
        grid=(N // tn, E, H // th),
        in_specs=[
            pl.BlockSpec((tn, D), lambda t, e, h: (t, 0)),        # ln2 output
            pl.BlockSpec((tn, E), lambda t, e, h: (t, 0)),        # gate (lane-dense)
            pl.BlockSpec((tn, D), lambda t, e, h: (t, 0)),        # residual
            pl.BlockSpec((1, D, th), lambda t, e, h: (e, 0, h)),  # w1 chunk
            pl.BlockSpec((1, 1, th), lambda t, e, h: (e, 0, h)),  # b1 chunk
            pl.BlockSpec((1, D, th), lambda t, e, h: (e, 0, h)),  # w2 chunk
            pl.BlockSpec((1, 1, th), lambda t, e, h: (e, 0, h)),  # b2 chunk
            pl.BlockSpec((1, th, D), lambda t, e, h: (e, h, 0)),  # wp chunk
            pl.BlockSpec((1, 1, D), lambda t, e, h: (e, 0, 0)),   # bp
        ],
        out_specs=pl.BlockSpec((tn, D), lambda t, e, h: (t, 0)),
        scratch_shapes=[pltpu.VMEM((tn, D), jnp.float32),   # output accumulator
                        pltpu.VMEM((tn, D), jnp.float32)],  # per-expert accumulator
        compiler_params=pltpu.CompilerParams(
            dimension_semantics=("parallel", "arbitrary", "arbitrary"),
            vmem_limit_bytes=32 * 1024 * 1024),
    )(h2d, gate_w, residual, p["w1"], p["b1"], p["w2"], p["b2"], p["wp"], p["bp"])


# -------------------- tied LM head fused with cross-entropy ------------------

def _lmhead_ce_kernel(x_ref, w_ref, t_ref, logits_ref, nll_ref,
                      m_ref, l_ref, tl_ref):
    vi = pl.program_id(1)
    tv = w_ref.shape[0]

    @pl.when(vi == 0)
    def _():
        m_ref[...] = jnp.full(m_ref.shape, -1e30, jnp.float32)
        l_ref[...] = jnp.zeros_like(l_ref)
        tl_ref[...] = jnp.zeros_like(tl_ref)

    x = x_ref[...].astype(_BF16)                                     # (tm, D)
    logits = lax.dot_general(x, w_ref[...], (((1,), (1,)), ((), ())),
                             preferred_element_type=jnp.float32)     # x @ wte.T
    logits_ref[...] = logits

    m_prev = m_ref[...]
    m_new = jnp.maximum(m_prev, jnp.max(logits, axis=-1, keepdims=True))
    alpha = jnp.exp(m_prev - m_new)
    l_ref[...] = alpha * l_ref[...] + jnp.sum(jnp.exp(logits - m_new),
                                              axis=-1, keepdims=True)
    m_ref[...] = m_new

    col = vi * tv + lax.broadcasted_iota(jnp.int32, logits.shape, 1)
    tl_ref[...] += jnp.sum(jnp.where(col == t_ref[...], logits, 0.0),
                           axis=-1, keepdims=True)

    @pl.when(vi == pl.num_programs(1) - 1)
    def _():
        nll_ref[...] = m_ref[...] + jnp.log(l_ref[...]) - tl_ref[...]


def lm_head_ce(x2d, wte, targets, *, tm=256, tv=512):
    """Tied lm_head (x @ wte.T) fused with log-softmax cross-entropy.
    Never materializes wte.T; logits tiled over the vocab axis."""
    M, D = x2d.shape
    V, _ = wte.shape
    tm = _pick_tile(M, tm, 8)
    tv = _pick_tile(V, tv, 128)
    return pl.pallas_call(
        _lmhead_ce_kernel,
        out_shape=(jax.ShapeDtypeStruct((M, V), jnp.float32),
                   jax.ShapeDtypeStruct((M, 1), jnp.float32)),
        grid=(M // tm, V // tv),
        in_specs=[pl.BlockSpec((tm, D), lambda i, v: (i, 0)),
                  pl.BlockSpec((tv, D), lambda i, v: (v, 0)),
                  pl.BlockSpec((tm, 1), lambda i, v: (i, 0))],
        out_specs=(pl.BlockSpec((tm, tv), lambda i, v: (i, v)),
                   pl.BlockSpec((tm, 1), lambda i, v: (i, 0))),
        scratch_shapes=[pltpu.VMEM((tm, 1), jnp.float32),
                        pltpu.VMEM((tm, 1), jnp.float32),
                        pltpu.VMEM((tm, 1), jnp.float32)],
        compiler_params=pltpu.CompilerParams(
            dimension_semantics=("parallel", "arbitrary")),
    )(x2d, wte, targets)


# ------------------------------- glue (JAX) ----------------------------------

def rope_angles(seq_len, head_dim):
    theta = 10000.0 ** (-jnp.arange(0, head_dim, 2, dtype=jnp.float32) / head_dim)
    pos = jnp.arange(seq_len, dtype=jnp.float32)
    return jnp.outer(pos, theta)                         # (T, hd/2)


# TODO(synk): fold RoPE + the (0,2,1,3) transposes into the attention kernel
# (pltpu.roll half-rotation form) to drop the extra HBM round trips.
def apply_rotation(x, angles):
    # x: (B, T, H, hd); matches RotaryPosEmbed.apply_rotation (interleaved pairs)
    sin = jnp.sin(angles)[None, :, None, :]
    cos = jnp.cos(angles)[None, :, None, :]
    x1 = x[..., 0::2]
    x2 = x[..., 1::2]
    x1r = x1 * cos - x2 * sin
    x2r = x1 * sin + x2 * cos
    return jnp.stack([x1r, x2r], axis=-1).reshape(x.shape)


def attention_forward(x2d, B, T, p, n_head, angles):
    D = x2d.shape[-1]
    hd = D // n_head
    qkv = ln_linear(x2d, p["ln1_w"], p["ln1_b"], p["w_attn"], p["b_attn"])
    qkv = qkv.reshape(B, T, 3 * D)
    q, k, v = jnp.split(qkv, 3, axis=-1)
    q = apply_rotation(q.reshape(B, T, n_head, hd), angles).transpose(0, 2, 1, 3)
    k = apply_rotation(k.reshape(B, T, n_head, hd), angles).transpose(0, 2, 1, 3)
    v = v.reshape(B, T, n_head, hd).transpose(0, 2, 1, 3)
    y = flash_attention(q, k, v)                         # (B, H, T, hd)
    y2d = y.transpose(0, 2, 1, 3).reshape(B * T, D)
    return linear(y2d, p["w_proj"], p["b_proj"], residual=x2d)   # x + c_proj(y)


def gate_forward(h2d, wg, k):
    logits = linear(h2d, wg)                             # bias-free gate
    # gate noise = randn * noisy_std * noise_weight; noise_weight == 0 -> exactly 0
    _, topi = lax.top_k(logits, k)
    sel = jnp.sum(jax.nn.one_hot(topi, logits.shape[-1], dtype=jnp.float32),
                  axis=-2) > 0
    sparse = jnp.where(sel, logits, -jnp.inf)
    return jax.nn.softmax(sparse, axis=-1)               # exact 0 for unselected experts


def block_forward(x, p, cfg, angles):
    B, T, D = x.shape
    x2d = x.reshape(B * T, D)
    x2d = attention_forward(x2d, B, T, p, cfg.n_head, angles)   # x + attn(ln1(x))
    h2d = layernorm(x2d, p["ln2_w"], p["ln2_b"])
    gate_w = gate_forward(h2d, p["gate_w"], cfg.k)              # (B*T, E)
    out2d = moe_experts(h2d, gate_w, x2d, p)                    # x + moe(ln2(x))
    avg_w = jnp.mean(gate_w, axis=0)
    avg_tok = jnp.mean((gate_w != 0).astype(jnp.float32), axis=0)
    aux = jnp.sum(avg_tok * avg_w) * cfg.num_experts
    return out2d.reshape(B, T, D), aux


def model_forward(params, idx, targets, cfg):
    B, T = idx.shape
    D = cfg.n_embd
    x = params["wte"][idx].astype(jnp.float32)           # embedding gather (glue)
    angles = rope_angles(T, D // cfg.n_head)
    aux_total = 0.0
    for p in params["blocks"]:
        x, aux = block_forward(x, p, cfg, angles)
        aux_total = aux_total + aux
    # TODO(synk): dist.all_reduce of MoE partial outputs is a no-op here
    # (single shard / world_size == 1), so no remote-DMA collective is emitted.
    xf = layernorm(x.reshape(B * T, D), params["lnf_w"], params["lnf_b"])
    logits, nll = lm_head_ce(xf, params["wte"],
                             targets.reshape(-1, 1).astype(jnp.int32))
    main_loss = jnp.mean(nll)
    total_loss = main_loss + cfg.aux_loss_scale * aux_total
    return logits.reshape(B, T, -1), total_loss


# ------------------------------ params / config ------------------------------

@dataclass
class Config:
    vocab_size: int = 128
    n_embd: int = 32
    n_head: int = 4
    seq_len: int = 8
    n_layer: int = 2
    num_experts: int = 4
    k: int = 2
    aux_loss_scale: float = 0.01
    moe_scale: float = 1.0   # stored but unused in the reference forward


def init_params(cfg, key):
    D = cfg.n_embd
    H = 4 * D
    E = cfg.num_experts
    ks = iter(jax.random.split(key, 64))

    def norm(shape, std, dtype=_BF16):
        return (std * jax.random.normal(next(ks), shape, jnp.float32)).astype(dtype)

    proj_std = 0.02 * (2 * cfg.n_layer) ** -0.5          # NANOGPT_SCALE_INIT
    params = {
        "wte": norm((cfg.vocab_size, D), 0.02),          # tied embedding / lm_head (bf16)
        "lnf_w": jnp.ones((D,), jnp.float32),
        "lnf_b": jnp.zeros((D,), jnp.float32),
        "blocks": [],
    }
    for _ in range(cfg.n_layer):
        params["blocks"].append({
            "ln1_w": jnp.ones((D,), jnp.float32), "ln1_b": jnp.zeros((D,), jnp.float32),
            "ln2_w": jnp.ones((D,), jnp.float32), "ln2_b": jnp.zeros((D,), jnp.float32),
            "w_attn": norm((D, 3 * D), 0.02), "b_attn": jnp.zeros((3 * D,), jnp.float32),
            "w_proj": norm((D, D), proj_std), "b_proj": jnp.zeros((D,), jnp.float32),
            "gate_w": norm((D, E), 0.02),
            "w1": norm((E, D, H), 0.01), "b1": jnp.zeros((E, 1, H), jnp.float32),
            "w2": norm((E, D, H), 0.01), "b2": jnp.zeros((E, 1, H), jnp.float32),
            "wp": norm((E, H, D), 0.01), "bp": jnp.zeros((E, 1, D), jnp.float32),
        })
    return params


if __name__ == "__main__":
    cfg = Config()
    key = jax.random.PRNGKey(0)
    pkey, ikey, tkey = jax.random.split(key, 3)
    params = init_params(cfg, pkey)

    B, T = 2, cfg.seq_len
    idx = jax.random.randint(ikey, (B, T), 0, cfg.vocab_size, dtype=jnp.int32)
    targets = jax.random.randint(tkey, (B, T), 0, cfg.vocab_size, dtype=jnp.int32)

    @jax.jit
    def run(params, idx, targets):
        return model_forward(params, idx, targets, cfg)

    logits, loss = run(params, idx, targets)
    jax.block_until_ready((logits, loss))
    assert logits.shape == (B, T, cfg.vocab_size)
    assert bool(jnp.isfinite(loss))
    print("KERNEL_OK")
</pallas_src>

<mosaic_0001>
module attributes {stable_mosaic.version = 11 : i64} {
  func.func @_ln_matmul_kernel(%arg0: i32, %arg1: i32, %arg2: memref<16x32xf32, #tpu.memory_space<vmem>>, %arg3: memref<1x32xf32, #tpu.memory_space<vmem>>, %arg4: memref<1x32xf32, #tpu.memory_space<vmem>>, %arg5: memref<32x96xbf16, #tpu.memory_space<vmem>>, %arg6: memref<1x96xf32, #tpu.memory_space<vmem>>, %arg7: memref<16x96xf32, #tpu.memory_space<vmem>>) attributes {dimension_semantics = [#tpu.dimension_semantics<parallel>, #tpu.dimension_semantics<parallel>], iteration_bounds = array<i64: 1, 1>, scalar_prefetch = 0 : i64, scratch_operands = 0 : i64, tpu.core_type = #tpu.core_type<tc>, window_params = [{transform_indices = @transform_0, window_bounds = array<i64: 16, 32>}, {pipeline_mode = #tpu.pipeline_mode<synchronous>, transform_indices = @transform_1, window_bounds = array<i64: 1, 32>}, {pipeline_mode = #tpu.pipeline_mode<synchronous>, transform_indices = @transform_2, window_bounds = array<i64: 1, 32>}, {transform_indices = @transform_3, window_bounds = array<i64: 32, 96>}, {transform_indices = @transform_4, window_bounds = array<i64: 1, 96>}, {transform_indices = @transform_5, window_bounds = array<i64: 16, 96>}]} {
    %c0 = arith.constant 0 : index
    %c0_0 = arith.constant 0 : index
    %0 = vector.load %arg2[%c0, %c0_0] : memref<16x32xf32, #tpu.memory_space<vmem>>, vector<16x32xf32>
    %cst = arith.constant dense<0.000000e+00> : vector<16xf32>
    %1 = vector.multi_reduction <add>, %0, %cst [1] : vector<16x32xf32> to vector<16xf32>
    %2 = vector.shape_cast %1 : vector<16xf32> to vector<16x1xf32>
    %cst_1 = arith.constant 3.200000e+01 : f32
    %3 = vector.broadcast %cst_1 : f32 to vector<16x1xf32>
    %4 = arith.divf %2, %3 : vector<16x1xf32>
    %5 = vector.broadcast %4 : vector<16x1xf32> to vector<16x32xf32>
    %6 = arith.subf %0, %5 : vector<16x32xf32>
    %7 = arith.mulf %6, %6 : vector<16x32xf32>
    %cst_2 = arith.constant dense<0.000000e+00> : vector<16xf32>
    %8 = vector.multi_reduction <add>, %7, %cst_2 [1] : vector<16x32xf32> to vector<16xf32>
    %9 = vector.shape_cast %8 : vector<16xf32> to vector<16x1xf32>
    %cst_3 = arith.constant 3.200000e+01 : f32
    %10 = vector.broadcast %cst_3 : f32 to vector<16x1xf32>
    %11 = arith.divf %9, %10 : vector<16x1xf32>
    %12 = vector.broadcast %4 : vector<16x1xf32> to vector<16x32xf32>
    %13 = arith.subf %0, %12 : vector<16x32xf32>
    %cst_4 = arith.constant 9.99999974E-6 : f32
    %14 = vector.broadcast %cst_4 : f32 to vector<16x1xf32>
    %15 = arith.addf %11, %14 : vector<16x1xf32>
    %16 = math.rsqrt %15 : vector<16x1xf32>
    %17 = vector.broadcast %16 : vector<16x1xf32> to vector<16x32xf32>
    %18 = arith.mulf %13, %17 : vector<16x32xf32>
    %c0_5 = arith.constant 0 : index
    %c0_6 = arith.constant 0 : index
    %19 = vector.load %arg3[%c0_5, %c0_6] : memref<1x32xf32, #tpu.memory_space<vmem>>, vector<1x32xf32>
    %20 = vector.broadcast %19 : vector<1x32xf32> to vector<16x32xf32>
    %21 = arith.mulf %18, %20 : vector<16x32xf32>
    %c0_7 = arith.constant 0 : index
    %c0_8 = arith.constant 0 : index
    %22 = vector.load %arg4[%c0_7, %c0_8] : memref<1x32xf32, #tpu.memory_space<vmem>>, vector<1x32xf32>
    %23 = vector.broadcast %22 : vector<1x32xf32> to vector<16x32xf32>
    %24 = arith.addf %21, %23 : vector<16x32xf32>
    %25 = arith.truncf %24 : vector<16x32xf32> to vector<16x32xbf16>
    %c0_9 = arith.constant 0 : index
    %c0_10 = arith.constant 0 : index
    %26 = vector.load %arg5[%c0_9, %c0_10] : memref<32x96xbf16, #tpu.memory_space<vmem>>, vector<32x96xbf16>
    %cst_11 = arith.constant dense<0.000000e+00> : vector<16x96xf32>
    %27 = tpu.matmul %25, %26, %cst_11 {dimension_numbers = #tpu.dot_dimension_numbers<[1], [0], [0], [1], [0, 0, 1, 1], [], []>} : vector<16x32xbf16>, vector<32x96xbf16>, vector<16x96xf32> -> vector<16x96xf32>
    %c0_12 = arith.constant 0 : index
    %c0_13 = arith.constant 0 : index
    %28 = vector.load %arg6[%c0_12, %c0_13] : memref<1x96xf32, #tpu.memory_space<vmem>>, vector<1x96xf32>
    %29 = vector.broadcast %28 : vector<1x96xf32> to vector<16x96xf32>
    %30 = arith.addf %27, %29 : vector<16x96xf32>
    %c0_14 = arith.constant 0 : index
    %c0_15 = arith.constant 0 : index
    %31 = vector.load %arg7[%c0_14, %c0_15] : memref<16x96xf32, #tpu.memory_space<vmem>>, vector<16x96xf32>
    tpu.vector_store %arg7[%c0_14, %c0_15], %30 {strides = array<i32>} : memref<16x96xf32, #tpu.memory_space<vmem>>, vector<16x96xf32>,
    return
  }
  func.func @transform_0(%arg0: i32, %arg1: i32) -> (i32, i32) {
    %c0_i32 = arith.constant 0 : i32
    %c0_i32_0 = arith.constant 0 : i32
    return %arg0, %c0_i32 : i32, i32
  }
  func.func @transform_1(%arg0: i32, %arg1: i32) -> (i32, i32) {
    %c0_i32 = arith.constant 0 : i32
    %c0_i32_0 = arith.constant 0 : i32
    %c0_i32_1 = arith.constant 0 : i32
    return %c0_i32, %c0_i32_0 : i32, i32
  }
  func.func @transform_2(%arg0: i32, %arg1: i32) -> (i32, i32) {
    %c0_i32 = arith.constant 0 : i32
    %c0_i32_0 = arith.constant 0 : i32
    %c0_i32_1 = arith.constant 0 : i32
    return %c0_i32, %c0_i32_0 : i32, i32
  }
  func.func @transform_3(%arg0: i32, %arg1: i32) -> (i32, i32) {
    %c0_i32 = arith.constant 0 : i32
    %c0_i32_0 = arith.constant 0 : i32
    return %c0_i32, %arg1 : i32, i32
  }
  func.func @transform_4(%arg0: i32, %arg1: i32) -> (i32, i32) {
    %c0_i32 = arith.constant 0 : i32
    %c0_i32_0 = arith.constant 0 : i32
    return %c0_i32, %arg1 : i32, i32
  }
  func.func @transform_5(%arg0: i32, %arg1: i32) -> (i32, i32) {
    %c0_i32 = arith.constant 0 : i32
    return %arg0, %arg1 : i32, i32
  }
}

module attributes {stable_mosaic.version = 11 : i64} {
  func.func @_flash_kernel(%arg0: i32, %arg1: i32, %arg2: i32, %arg3: i32, %arg4: memref<1x1x8x8xf32, #tpu.memory_space<vmem>>, %arg5: memref<1x1x8x8xf32, #tpu.memory_space<vmem>>, %arg6: memref<1x1x8x8xf32, #tpu.memory_space<vmem>>, %arg7: memref<1x1x8x8xf32, #tpu.memory_space<vmem>>, %arg8: memref<8x1xf32, #tpu.memory_space<vmem>>, %arg9: memref<8x1xf32, #tpu.memory_space<vmem>>, %arg10: memref<8x8xf32, #tpu.memory_space<vmem>>) attributes {dimension_semantics = [#tpu.dimension_semantics<parallel>, #tpu.dimension_semantics<parallel>, #tpu.dimension_semantics<parallel>, #tpu.dimension_semantics<arbitrary>], iteration_bounds = array<i64: 2, 4, 1, 1>, scalar_prefetch = 0 : i64, scratch_operands = 3 : i64, tpu.core_type = #tpu.core_type<tc>, window_params = [{transform_indices = @transform_0, window_bounds = array<i64: 1, 1, 8, 8>}, {transform_indices = @transform_1, window_bounds = array<i64: 1, 1, 8, 8>}, {transform_indices = @transform_2, window_bounds = array<i64: 1, 1, 8, 8>}, {transform_indices = @transform_3, window_bounds = array<i64: 1, 1, 8, 8>}]} {
    %c0_i32 = arith.constant 0 : i32
    %0 = arith.cmpi eq, %arg3, %c0_i32 : i32
    %1 = arith.extui %0 : i1 to i32
    %c0_i32_0 = arith.constant 0 : i32
    %2 = arith.cmpi ne, %1, %c0_i32_0 : i32
    scf.if %2 {
      %cst = arith.constant -1.000000e+30 : f32
      %12 = vector.broadcast %cst : f32 to vector<8x1xf32>
      %c0 = arith.constant 0 : index
      %c0_5 = arith.constant 0 : index
      %13 = vector.load %arg8[%c0, %c0_5] : memref<8x1xf32, #tpu.memory_space<vmem>>, vector<8x1xf32>
      tpu.vector_store %arg8[%c0, %c0_5], %12 {strides = array<i32>} : memref<8x1xf32, #tpu.memory_space<vmem>>, vector<8x1xf32>,
      %cst_6 = arith.constant 0.000000e+00 : f32
      %14 = vector.broadcast %cst_6 : f32 to vector<8x1xf32>
      %c0_7 = arith.constant 0 : index
      %c0_8 = arith.constant 0 : index
      %15 = vector.load %arg9[%c0_7, %c0_8] : memref<8x1xf32, #tpu.memory_space<vmem>>, vector<8x1xf32>
      tpu.vector_store %arg9[%c0_7, %c0_8], %14 {strides = array<i32>} : memref<8x1xf32, #tpu.memory_space<vmem>>, vector<8x1xf32>,
      %cst_9 = arith.constant 0.000000e+00 : f32
      %16 = vector.broadcast %cst_9 : f32 to vector<8x8xf32>
      %c0_10 = arith.constant 0 : index
      %c0_11 = arith.constant 0 : index
      %17 = vector.load %arg10[%c0_10, %c0_11] : memref<8x8xf32, #tpu.memory_space<vmem>>, vector<8x8xf32>
      tpu.vector_store %arg10[%c0_10, %c0_11], %16 {strides = array<i32>} : memref<8x8xf32, #tpu.memory_space<vmem>>, vector<8x8xf32>,
    } else {
    }
    %c8_i32 = arith.constant 8 : i32
    %3 = arith.muli %arg3, %c8_i32 : i32
    %c1_i32 = arith.constant 1 : i32
    %4 = arith.addi %arg2, %c1_i32 : i32
    %c8_i32_1 = arith.constant 8 : i32
    %5 = arith.muli %4, %c8_i32_1 : i32
    %6 = arith.cmpi slt, %3, %5 : i32
    %7 = arith.extui %6 : i1 to i32
    %c0_i32_2 = arith.constant 0 : i32
    %8 = arith.cmpi ne, %7, %c0_i32_2 : i32
    scf.if %8 {
      %c0 = arith.constant 0 : index
      %c0_5 = arith.constant 0 : index
      %c0_6 = arith.constant 0 : index
      %c0_7 = arith.constant 0 : index
      %12 = vector.load %arg4[%c0, %c0_5, %c0_6, %c0_7] : memref<1x1x8x8xf32, #tpu.memory_space<vmem>>, vector<1x1x8x8xf32>
      %13 = vector.shape_cast %12 : vector<1x1x8x8xf32> to vector<8x8xf32>
      %cst = arith.constant 0.353553385 : f32
      %14 = vector.broadcast %cst : f32 to vector<8x8xf32>
      %15 = arith.mulf %13, %14 : vector<8x8xf32>
      %16 = arith.truncf %15 : vector<8x8xf32> to vector<8x8xbf16>
      %c0_8 = arith.constant 0 : index
      %c0_9 = arith.constant 0 : index
      %c0_10 = arith.constant 0 : index
      %c0_11 = arith.constant 0 : index
      %17 = vector.load %arg5[%c0_8, %c0_9, %c0_10, %c0_11] : memref<1x1x8x8xf32, #tpu.memory_space<vmem>>, vector<1x1x8x8xf32>
      %18 = vector.shape_cast %17 : vector<1x1x8x8xf32> to vector<8x8xf32>
      %19 = arith.truncf %18 : vector<8x8xf32> to vector<8x8xbf16>
      %c0_12 = arith.constant 0 : index
      %c0_13 = arith.constant 0 : index
      %c0_14 = arith.constant 0 : index
      %c0_15 = arith.constant 0 : index
      %20 = vector.load %arg6[%c0_12, %c0_13, %c0_14, %c0_15] : memref<1x1x8x8xf32, #tpu.memory_space<vmem>>, vector<1x1x8x8xf32>
      %21 = vector.shape_cast %20 : vector<1x1x8x8xf32> to vector<8x8xf32>
      %22 = arith.truncf %21 : vector<8x8xf32> to vector<8x8xbf16>
      %cst_16 = arith.constant dense<0.000000e+00> : vector<8x8xf32>
      %23 = tpu.matmul %16, %19, %cst_16 {dimension_numbers = #tpu.dot_dimension_numbers<[1], [1], [0], [0], [0, 0, 1, 0], [], []>} : vector<8x8xbf16>, vector<8x8xbf16>, vector<8x8xf32> -> vector<8x8xf32>
      %c8_i32_17 = arith.constant 8 : i32
      %24 = arith.muli %arg2, %c8_i32_17 : i32
      %25 = tpu.iota {dimensions = array<i32: 0>} : vector<8x8xi32>
      %26 = vector.broadcast %24 : i32 to vector<8x8xi32>
      %27 = arith.addi %26, %25 : vector<8x8xi32>
      %c8_i32_18 = arith.constant 8 : i32
      %28 = arith.muli %arg3, %c8_i32_18 : i32
      %29 = tpu.iota {dimensions = array<i32: 1>} : vector<8x8xi32>
      %30 = vector.broadcast %28 : i32 to vector<8x8xi32>
      %31 = arith.addi %30, %29 : vector<8x8xi32>
      %32 = arith.cmpi sle, %31, %27 : vector<8x8xi32>
      %cst_19 = arith.constant -1.000000e+30 : f32
      %33 = vector.broadcast %cst_19 : f32 to vector<8x8xf32>
      %34 = arith.select %32, %23, %33 : vector<8x8xi1>, vector<8x8xf32>
      %c0_20 = arith.constant 0 : index
      %c0_21 = arith.constant 0 : index
      %35 = vector.load %arg8[%c0_20, %c0_21] : memref<8x1xf32, #tpu.memory_space<vmem>>, vector<8x1xf32>
      %cst_22 = arith.constant dense<0xFF800000> : vector<8xf32>
      %36 = vector.multi_reduction <maximumf>, %34, %cst_22 [1] : vector<8x8xf32> to vector<8xf32>
      %37 = vector.shape_cast %36 : vector<8xf32> to vector<8x1xf32>
      %38 = arith.maximumf %35, %37 : vector<8x1xf32>
      %39 = arith.subf %35, %38 : vector<8x1xf32>
      %40 = math.exp %39 : vector<8x1xf32>
      %41 = vector.broadcast %38 : vector<8x1xf32> to vector<8x8xf32>
      %42 = arith.subf %34, %41 : vector<8x8xf32>
      %43 = math.exp %42 : vector<8x8xf32>
      %c0_23 = arith.constant 0 : index
      %c0_24 = arith.constant 0 : index
      %44 = vector.load %arg9[%c0_23, %c0_24] : memref<8x1xf32, #tpu.memory_space<vmem>>, vector<8x1xf32>
      %45 = arith.mulf %40, %44 : vector<8x1xf32>
      %cst_25 = arith.constant dense<0.000000e+00> : vector<8xf32>
      %46 = vector.multi_reduction <add>, %43, %cst_25 [1] : vector<8x8xf32> to vector<8xf32>
      %47 = vector.shape_cast %46 : vector<8xf32> to vector<8x1xf32>
      %48 = arith.addf %45, %47 : vector<8x1xf32>
      %c0_26 = arith.constant 0 : index
      %c0_27 = arith.constant 0 : index
      %49 = vector.load %arg9[%c0_26, %c0_27] : memref<8x1xf32, #tpu.memory_space<vmem>>, vector<8x1xf32>
      tpu.vector_store %arg9[%c0_26, %c0_27], %48 {strides = array<i32>} : memref<8x1xf32, #tpu.memory_space<vmem>>, vector<8x1xf32>,
      %c0_28 = arith.constant 0 : index
      %c0_29 = arith.constant 0 : index
      %50 = vector.load %arg10[%c0_28, %c0_29] : memref<8x8xf32, #tpu.memory_space<vmem>>, vector<8x8xf32>
      %51 = vector.broadcast %40 : vector<8x1xf32> to vector<8x8xf32>
      %52 = arith.mulf %51, %50 : vector<8x8xf32>
      %53 = arith.truncf %43 : vector<8x8xf32> to vector<8x8xbf16>
      %cst_30 = arith.constant dense<0.000000e+00> : vector<8x8xf32>
      %54 = tpu.matmul %53, %22, %cst_30 {dimension_numbers = #tpu.dot_dimension_numbers<[1], [0], [0], [1], [0, 0, 1, 1], [], []>} : vector<8x8xbf16>, vector<8x8xbf16>, vector<8x8xf32> -> vector<8x8xf32>
      %55 = arith.addf %52, %54 : vector<8x8xf32>
      %c0_31 = arith.constant 0 : index
      %c0_32 = arith.constant 0 : index
      %56 = vector.load %arg10[%c0_31, %c0_32] : memref<8x8xf32, #tpu.memory_space<vmem>>, vector<8x8xf32>
      tpu.vector_store %arg10[%c0_31, %c0_32], %55 {strides = array<i32>} : memref<8x8xf32, #tpu.memory_space<vmem>>, vector<8x8xf32>,
      %c0_33 = arith.constant 0 : index
      %c0_34 = arith.constant 0 : index
      %57 = vector.load %arg8[%c0_33, %c0_34] : memref<8x1xf32, #tpu.memory_space<vmem>>, vector<8x1xf32>
      tpu.vector_store %arg8[%c0_33, %c0_34], %38 {strides = array<i32>} : memref<8x1xf32, #tpu.memory_space<vmem>>, vector<8x1xf32>,
    } else {
    }
    %c0_i32_3 = arith.constant 0 : i32
    %9 = arith.cmpi eq, %arg3, %c0_i32_3 : i32
    %10 = arith.extui %9 : i1 to i32
    %c0_i32_4 = arith.constant 0 : i32
    %11 = arith.cmpi ne, %10, %c0_i32_4 : i32
    scf.if %11 {
      %c0 = arith.constant 0 : index
      %c0_5 = arith.constant 0 : index
      %12 = vector.load %arg10[%c0, %c0_5] : memref<8x8xf32, #tpu.memory_space<vmem>>, vector<8x8xf32>
      %c0_6 = arith.constant 0 : index
      %c0_7 = arith.constant 0 : index
      %13 = vector.load %arg9[%c0_6, %c0_7] : memref<8x1xf32, #tpu.memory_space<vmem>>, vector<8x1xf32>
      %14 = tpu.reciprocal %13 {approx = true} : vector<8x1xf32> -> vector<8x1xf32>
      %15 = vector.broadcast %14 : vector<8x1xf32> to vector<8x8xf32>
      %16 = arith.mulf %12, %15 : vector<8x8xf32>
      %c0_8 = arith.constant 0 : index
      %c0_9 = arith.constant 0 : index
      %c0_10 = arith.constant 0 : index
      %c0_11 = arith.constant 0 : index
      %17 = vector.load %arg7[%c0_8, %c0_9, %c0_10, %c0_11] : memref<1x1x8x8xf32, #tpu.memory_space<vmem>>, vector<1x1x8x8xf32>
      %18 = vector.shape_cast %17 : vector<1x1x8x8xf32> to vector<8x8xf32>
      %19 = vector.shape_cast %16 : vector<8x8xf32> to vector<1x1x8x8xf32>
      tpu.vector_store %arg7[%c0_8, %c0_9, %c0_10, %c0_11], %19 {strides = array<i32>} : memref<1x1x8x8xf32, #tpu.memory_space<vmem>>, vector<1x1x8x8xf32>,
    } else {
    }
    return
  }
  func.func @transform_0(%arg0: i32, %arg1: i32, %arg2: i32, %arg3: i32) -> (i32, i32, i32, i32) {
    %c0_i32 = arith.constant 0 : i32
    %c0_i32_0 = arith.constant 0 : i32
    return %arg0, %arg1, %arg2, %c0_i32 : i32, i32, i32, i32
  }
  func.func @transform_1(%arg0: i32, %arg1: i32, %arg2: i32, %arg3: i32) -> (i32, i32, i32, i32) {
    %c0_i32 = arith.constant 0 : i32
    %c0_i32_0 = arith.constant 0 : i32
    return %arg0, %arg1, %arg3, %c0_i32 : i32, i32, i32, i32
  }
  func.func @transform_2(%arg0: i32, %arg1: i32, %arg2: i32, %arg3: i32) -> (i32, i32, i32, i32) {
    %c0_i32 = arith.constant 0 : i32
    %c0_i32_0 = arith.constant 0 : i32
    return %arg0, %arg1, %arg3, %c0_i32 : i32, i32, i32, i32
  }
  func.func @transform_3(%arg0: i32, %arg1: i32, %arg2: i32, %arg3: i32) -> (i32, i32, i32, i32) {
    %c0_i32 = arith.constant 0 : i32
    %c0_i32_0 = arith.constant 0 : i32
    return %arg0, %arg1, %arg2, %c0_i32 : i32, i32, i32, i32
  }
}

module attributes {stable_mosaic.version = 11 : i64} {
  func.func @_matmul_res_kernel(%arg0: i32, %arg1: i32, %arg2: i32, %arg3: memref<16x32xf32, #tpu.memory_space<vmem>>, %arg4: memref<32x32xbf16, #tpu.memory_space<vmem>>, %arg5: memref<1x32xf32, #tpu.memory_space<vmem>>, %arg6: memref<16x32xf32, #tpu.memory_space<vmem>>, %arg7: memref<16x32xf32, #tpu.memory_space<vmem>>, %arg8: memref<16x32xf32, #tpu.memory_space<vmem>>) attributes {dimension_semantics = [#tpu.dimension_semantics<parallel>, #tpu.dimension_semantics<parallel>, #tpu.dimension_semantics<arbitrary>], iteration_bounds = array<i64: 1, 1, 1>, scalar_prefetch = 0 : i64, scratch_operands = 1 : i64, tpu.core_type = #tpu.core_type<tc>, window_params = [{transform_indices = @transform_0, window_bounds = array<i64: 16, 32>}, {transform_indices = @transform_1, window_bounds = array<i64: 32, 32>}, {transform_indices = @transform_2, window_bounds = array<i64: 1, 32>}, {transform_indices = @transform_3, window_bounds = array<i64: 16, 32>}, {transform_indices = @transform_4, window_bounds = array<i64: 16, 32>}]} {
    %c0_i32 = arith.constant 0 : i32
    %0 = arith.cmpi eq, %arg2, %c0_i32 : i32
    %1 = arith.extui %0 : i1 to i32
    %c0_i32_0 = arith.constant 0 : i32
    %2 = arith.cmpi ne, %1, %c0_i32_0 : i32
    scf.if %2 {
      %cst_10 = arith.constant 0.000000e+00 : f32
      %13 = vector.broadcast %cst_10 : f32 to vector<16x32xf32>
      %c0_11 = arith.constant 0 : index
      %c0_12 = arith.constant 0 : index
      %14 = vector.load %arg8[%c0_11, %c0_12] : memref<16x32xf32, #tpu.memory_space<vmem>>, vector<16x32xf32>
      tpu.vector_store %arg8[%c0_11, %c0_12], %13 {strides = array<i32>} : memref<16x32xf32, #tpu.memory_space<vmem>>, vector<16x32xf32>,
    } else {
    }
    %c0 = arith.constant 0 : index
    %c0_1 = arith.constant 0 : index
    %3 = vector.load %arg8[%c0, %c0_1] : memref<16x32xf32, #tpu.memory_space<vmem>>, vector<16x32xf32>
    %c0_2 = arith.constant 0 : index
    %c0_3 = arith.constant 0 : index
    %4 = vector.load %arg3[%c0_2, %c0_3] : memref<16x32xf32, #tpu.memory_space<vmem>>, vector<16x32xf32>
    %5 = arith.truncf %4 : vector<16x32xf32> to vector<16x32xbf16>
    %c0_4 = arith.constant 0 : index
    %c0_5 = arith.constant 0 : index
    %6 = vector.load %arg4[%c0_4, %c0_5] : memref<32x32xbf16, #tpu.memory_space<vmem>>, vector<32x32xbf16>
    %cst = arith.constant dense<0.000000e+00> : vector<16x32xf32>
    %7 = tpu.matmul %5, %6, %cst {dimension_numbers = #tpu.dot_dimension_numbers<[1], [0], [0], [1], [0, 0, 1, 1], [], []>} : vector<16x32xbf16>, vector<32x32xbf16>, vector<16x32xf32> -> vector<16x32xf32>
    %8 = arith.addf %3, %7 : vector<16x32xf32>
    %c0_6 = arith.constant 0 : index
    %c0_7 = arith.constant 0 : index
    %9 = vector.load %arg8[%c0_6, %c0_7] : memref<16x32xf32, #tpu.memory_space<vmem>>, vector<16x32xf32>
    tpu.vector_store %arg8[%c0_6, %c0_7], %8 {strides = array<i32>} : memref<16x32xf32, #tpu.memory_space<vmem>>, vector<16x32xf32>,
    %c0_i32_8 = arith.constant 0 : i32
    %10 = arith.cmpi eq, %arg2, %c0_i32_8 : i32
    %11 = arith.extui %10 : i1 to i32
    %c0_i32_9 = arith.constant 0 : i32
    %12 = arith.cmpi ne, %11, %c0_i32_9 : i32
    scf.if %12 {
      %c0_10 = arith.constant 0 : index
      %c0_11 = arith.constant 0 : index
      %13 = vector.load %arg8[%c0_10, %c0_11] : memref<16x32xf32, #tpu.memory_space<vmem>>, vector<16x32xf32>
      %c0_12 = arith.constant 0 : index
      %c0_13 = arith.constant 0 : index
      %14 = vector.load %arg5[%c0_12, %c0_13] : memref<1x32xf32, #tpu.memory_space<vmem>>, vector<1x32xf32>
      %15 = vector.broadcast %14 : vector<1x32xf32> to vector<16x32xf32>
      %16 = arith.addf %13, %15 : vector<16x32xf32>
      %c0_14 = arith.constant 0 : index
      %c0_15 = arith.constant 0 : index
      %17 = vector.load %arg6[%c0_14, %c0_15] : memref<16x32xf32, #tpu.memory_space<vmem>>, vector<16x32xf32>
      %18 = arith.addf %16, %17 : vector<16x32xf32>
      %c0_16 = arith.constant 0 : index
      %c0_17 = arith.constant 0 : index
      %19 = vector.load %arg7[%c0_16, %c0_17] : memref<16x32xf32, #tpu.memory_space<vmem>>, vector<16x32xf32>
      tpu.vector_store %arg7[%c0_16, %c0_17], %18 {strides = array<i32>} : memref<16x32xf32, #tpu.memory_space<vmem>>, vector<16x32xf32>,
    } else {
    }
    return
  }
  func.func @transform_0(%arg0: i32, %arg1: i32, %arg2: i32) -> (i32, i32) {
    %c0_i32 = arith.constant 0 : i32
    return %arg0, %arg2 : i32, i32
  }
  func.func @transform_1(%arg0: i32, %arg1: i32, %arg2: i32) -> (i32, i32) {
    %c0_i32 = arith.constant 0 : i32
    return %arg2, %arg1 : i32, i32
  }
  func.func @transform_2(%arg0: i32, %arg1: i32, %arg2: i32) -> (i32, i32) {
    %c0_i32 = arith.constant 0 : i32
    %c0_i32_0 = arith.constant 0 : i32
    return %c0_i32, %arg1 : i32, i32
  }
  func.func @transform_3(%arg0: i32, %arg1: i32, %arg2: i32) -> (i32, i32) {
    %c0_i32 = arith.constant 0 : i32
    return %arg0, %arg1 : i32, i32
  }
  func.func @transform_4(%arg0: i32, %arg1: i32, %arg2: i32) -> (i32, i32) {
    %c0_i32 = arith.constant 0 : i32
    return %arg0, %arg1 : i32, i32
  }
}

module attributes {stable_mosaic.version = 11 : i64} {
  func.func @_layernorm_kernel(%arg0: i32, %arg1: memref<16x32xf32, #tpu.memory_space<vmem>>, %arg2: memref<1x32xf32, #tpu.memory_space<vmem>>, %arg3: memref<1x32xf32, #tpu.memory_space<vmem>>, %arg4: memref<16x32xf32, #tpu.memory_space<vmem>>) attributes {dimension_semantics = [#tpu.dimension_semantics<parallel>], iteration_bounds = array<i64: 1>, scalar_prefetch = 0 : i64, scratch_operands = 0 : i64, tpu.core_type = #tpu.core_type<tc>, window_params = [{transform_indices = @transform_0, window_bounds = array<i64: 16, 32>}, {pipeline_mode = #tpu.pipeline_mode<synchronous>, transform_indices = @transform_1, window_bounds = array<i64: 1, 32>}, {pipeline_mode = #tpu.pipeline_mode<synchronous>, transform_indices = @transform_2, window_bounds = array<i64: 1, 32>}, {transform_indices = @transform_3, window_bounds = array<i64: 16, 32>}]} {
    %c0 = arith.constant 0 : index
    %c0_0 = arith.constant 0 : index
    %0 = vector.load %arg1[%c0, %c0_0] : memref<16x32xf32, #tpu.memory_space<vmem>>, vector<16x32xf32>
    %cst = arith.constant dense<0.000000e+00> : vector<16xf32>
    %1 = vector.multi_reduction <add>, %0, %cst [1] : vector<16x32xf32> to vector<16xf32>
    %2 = vector.shape_cast %1 : vector<16xf32> to vector<16x1xf32>
    %cst_1 = arith.constant 3.200000e+01 : f32
    %3 = vector.broadcast %cst_1 : f32 to vector<16x1xf32>
    %4 = arith.divf %2, %3 : vector<16x1xf32>
    %5 = vector.broadcast %4 : vector<16x1xf32> to vector<16x32xf32>
    %6 = arith.subf %0, %5 : vector<16x32xf32>
    %7 = arith.mulf %6, %6 : vector<16x32xf32>
    %cst_2 = arith.constant dense<0.000000e+00> : vector<16xf32>
    %8 = vector.multi_reduction <add>, %7, %cst_2 [1] : vector<16x32xf32> to vector<16xf32>
    %9 = vector.shape_cast %8 : vector<16xf32> to vector<16x1xf32>
    %cst_3 = arith.constant 3.200000e+01 : f32
    %10 = vector.broadcast %cst_3 : f32 to vector<16x1xf32>
    %11 = arith.divf %9, %10 : vector<16x1xf32>
    %12 = vector.broadcast %4 : vector<16x1xf32> to vector<16x32xf32>
    %13 = arith.subf %0, %12 : vector<16x32xf32>
    %cst_4 = arith.constant 9.99999974E-6 : f32
    %14 = vector.broadcast %cst_4 : f32 to vector<16x1xf32>
    %15 = arith.addf %11, %14 : vector<16x1xf32>
    %16 = math.rsqrt %15 : vector<16x1xf32>
    %17 = vector.broadcast %16 : vector<16x1xf32> to vector<16x32xf32>
    %18 = arith.mulf %13, %17 : vector<16x32xf32>
    %c0_5 = arith.constant 0 : index
    %c0_6 = arith.constant 0 : index
    %19 = vector.load %arg2[%c0_5, %c0_6] : memref<1x32xf32, #tpu.memory_space<vmem>>, vector<1x32xf32>
    %20 = vector.broadcast %19 : vector<1x32xf32> to vector<16x32xf32>
    %21 = arith.mulf %18, %20 : vector<16x32xf32>
    %c0_7 = arith.constant 0 : index
    %c0_8 = arith.constant 0 : index
    %22 = vector.load %arg3[%c0_7, %c0_8] : memref<1x32xf32, #tpu.memory_space<vmem>>, vector<1x32xf32>
    %23 = vector.broadcast %22 : vector<1x32xf32> to vector<16x32xf32>
    %24 = arith.addf %21, %23 : vector<16x32xf32>
    %c0_9 = arith.constant 0 : index
    %c0_10 = arith.constant 0 : index
    %25 = vector.load %arg4[%c0_9, %c0_10] : memref<16x32xf32, #tpu.memory_space<vmem>>, vector<16x32xf32>
    tpu.vector_store %arg4[%c0_9, %c0_10], %24 {strides = array<i32>} : memref<16x32xf32, #tpu.memory_space<vmem>>, vector<16x32xf32>,
    return
  }
  func.func @transform_0(%arg0: i32) -> (i32, i32) {
    %c0_i32 = arith.constant 0 : i32
    %c0_i32_0 = arith.constant 0 : i32
    return %arg0, %c0_i32 : i32, i32
  }
  func.func @transform_1(%arg0: i32) -> (i32, i32) {
    %c0_i32 = arith.constant 0 : i32
    %c0_i32_0 = arith.constant 0 : i32
    %c0_i32_1 = arith.constant 0 : i32
    return %c0_i32, %c0_i32_0 : i32, i32
  }
  func.func @transform_2(%arg0: i32) -> (i32, i32) {
    %c0_i32 = arith.constant 0 : i32
    %c0_i32_0 = arith.constant 0 : i32
    %c0_i32_1 = arith.constant 0 : i32
    return %c0_i32, %c0_i32_0 : i32, i32
  }
  func.func @transform_3(%arg0: i32) -> (i32, i32) {
    %c0_i32 = arith.constant 0 : i32
    %c0_i32_0 = arith.constant 0 : i32
    return %arg0, %c0_i32 : i32, i32
  }
}

module attributes {stable_mosaic.version = 11 : i64} {
  func.func @_matmul_kernel(%arg0: i32, %arg1: i32, %arg2: i32, %arg3: memref<16x32xf32, #tpu.memory_space<vmem>>, %arg4: memref<32x4xbf16, #tpu.memory_space<vmem>>, %arg5: memref<1x4xf32, #tpu.memory_space<vmem>>, %arg6: memref<16x4xf32, #tpu.memory_space<vmem>>, %arg7: memref<16x4xf32, #tpu.memory_space<vmem>>) attributes {dimension_semantics = [#tpu.dimension_semantics<parallel>, #tpu.dimension_semantics<parallel>, #tpu.dimension_semantics<arbitrary>], iteration_bounds = array<i64: 1, 1, 1>, scalar_prefetch = 0 : i64, scratch_operands = 1 : i64, tpu.core_type = #tpu.core_type<tc>, window_params = [{transform_indices = @transform_0, window_bounds = array<i64: 16, 32>}, {transform_indices = @transform_1, window_bounds = array<i64: 32, 4>}, {transform_indices = @transform_2, window_bounds = array<i64: 1, 4>}, {transform_indices = @transform_3, window_bounds = array<i64: 16, 4>}]} {
    %c0_i32 = arith.constant 0 : i32
    %0 = arith.cmpi eq, %arg2, %c0_i32 : i32
    %1 = arith.extui %0 : i1 to i32
    %c0_i32_0 = arith.constant 0 : i32
    %2 = arith.cmpi ne, %1, %c0_i32_0 : i32
    scf.if %2 {
      %cst_10 = arith.constant 0.000000e+00 : f32
      %13 = vector.broadcast %cst_10 : f32 to vector<16x4xf32>
      %c0_11 = arith.constant 0 : index
      %c0_12 = arith.constant 0 : index
      %14 = vector.load %arg7[%c0_11, %c0_12] : memref<16x4xf32, #tpu.memory_space<vmem>>, vector<16x4xf32>
      tpu.vector_store %arg7[%c0_11, %c0_12], %13 {strides = array<i32>} : memref<16x4xf32, #tpu.memory_space<vmem>>, vector<16x4xf32>,
    } else {
    }
    %c0 = arith.constant 0 : index
    %c0_1 = arith.constant 0 : index
    %3 = vector.load %arg7[%c0, %c0_1] : memref<16x4xf32, #tpu.memory_space<vmem>>, vector<16x4xf32>
    %c0_2 = arith.constant 0 : index
    %c0_3 = arith.constant 0 : index
    %4 = vector.load %arg3[%c0_2, %c0_3] : memref<16x32xf32, #tpu.memory_space<vmem>>, vector<16x32xf32>
    %5 = arith.truncf %4 : vector<16x32xf32> to vector<16x32xbf16>
    %c0_4 = arith.constant 0 : index
    %c0_5 = arith.constant 0 : index
    %6 = vector.load %arg4[%c0_4, %c0_5] : memref<32x4xbf16, #tpu.memory_space<vmem>>, vector<32x4xbf16>
    %cst = arith.constant dense<0.000000e+00> : vector<16x4xf32>
    %7 = tpu.matmul %5, %6, %cst {dimension_numbers = #tpu.dot_dimension_numbers<[1], [0], [0], [1], [0, 0, 1, 1], [], []>} : vector<16x32xbf16>, vector<32x4xbf16>, vector<16x4xf32> -> vector<16x4xf32>
    %8 = arith.addf %3, %7 : vector<16x4xf32>
    %c0_6 = arith.constant 0 : index
    %c0_7 = arith.constant 0 : index
    %9 = vector.load %arg7[%c0_6, %c0_7] : memref<16x4xf32, #tpu.memory_space<vmem>>, vector<16x4xf32>
    tpu.vector_store %arg7[%c0_6, %c0_7], %8 {strides = array<i32>} : memref<16x4xf32, #tpu.memory_space<vmem>>, vector<16x4xf32>,
    %c0_i32_8 = arith.constant 0 : i32
    %10 = arith.cmpi eq, %arg2, %c0_i32_8 : i32
    %11 = arith.extui %10 : i1 to i32
    %c0_i32_9 = arith.constant 0 : i32
    %12 = arith.cmpi ne, %11, %c0_i32_9 : i32
    scf.if %12 {
      %c0_10 = arith.constant 0 : index
      %c0_11 = arith.constant 0 : index
      %13 = vector.load %arg7[%c0_10, %c0_11] : memref<16x4xf32, #tpu.memory_space<vmem>>, vector<16x4xf32>
      %c0_12 = arith.constant 0 : index
      %c0_13 = arith.constant 0 : index
      %14 = vector.load %arg5[%c0_12, %c0_13] : memref<1x4xf32, #tpu.memory_space<vmem>>, vector<1x4xf32>
      %15 = vector.broadcast %14 : vector<1x4xf32> to vector<16x4xf32>
      %16 = arith.addf %13, %15 : vector<16x4xf32>
      %c0_14 = arith.constant 0 : index
      %c0_15 = arith.constant 0 : index
      %17 = vector.load %arg6[%c0_14, %c0_15] : memref<16x4xf32, #tpu.memory_space<vmem>>, vector<16x4xf32>
      tpu.vector_store %arg6[%c0_14, %c0_15], %16 {strides = array<i32>} : memref<16x4xf32, #tpu.memory_space<vmem>>, vector<16x4xf32>,
    } else {
    }
    return
  }
  func.func @transform_0(%arg0: i32, %arg1: i32, %arg2: i32) -> (i32, i32) {
    %c0_i32 = arith.constant 0 : i32
    return %arg0, %arg2 : i32, i32
  }
  func.func @transform_1(%arg0: i32, %arg1: i32, %arg2: i32) -> (i32, i32) {
    %c0_i32 = arith.constant 0 : i32
    return %arg2, %arg1 : i32, i32
  }
  func.func @transform_2(%arg0: i32, %arg1: i32, %arg2: i32) -> (i32, i32) {
    %c0_i32 = arith.constant 0 : i32
    %c0_i32_0 = arith.constant 0 : i32
    return %c0_i32, %arg1 : i32, i32
  }
  func.func @transform_3(%arg0: i32, %arg1: i32, %arg2: i32) -> (i32, i32) {
    %c0_i32 = arith.constant 0 : i32
    return %arg0, %arg1 : i32, i32
  }
}

module attributes {stable_mosaic.version = 11 : i64} {
  func.func @_moe_kernel(%arg0: i32, %arg1: i32, %arg2: i32, %arg3: memref<16x32xf32, #tpu.memory_space<vmem>>, %arg4: memref<16x4xf32, #tpu.memory_space<vmem>>, %arg5: memref<16x32xf32, #tpu.memory_space<vmem>>, %arg6: memref<1x32x128xbf16, #tpu.memory_space<vmem>>, %arg7: memref<1x1x128xf32, #tpu.memory_space<vmem>>, %arg8: memref<1x32x128xbf16, #tpu.memory_space<vmem>>, %arg9: memref<1x1x128xf32, #tpu.memory_space<vmem>>, %arg10: memref<1x128x32xbf16, #tpu.memory_space<vmem>>, %arg11: memref<1x1x32xf32, #tpu.memory_space<vmem>>, %arg12: memref<16x32xf32, #tpu.memory_space<vmem>>, %arg13: memref<16x32xf32, #tpu.memory_space<vmem>>, %arg14: memref<16x32xf32, #tpu.memory_space<vmem>>) attributes {dimension_semantics = [#tpu.dimension_semantics<parallel>, #tpu.dimension_semantics<arbitrary>, #tpu.dimension_semantics<arbitrary>], iteration_bounds = array<i64: 1, 4, 1>, scalar_prefetch = 0 : i64, scratch_operands = 2 : i64, tpu.core_type = #tpu.core_type<tc>, window_params = [{transform_indices = @transform_0, window_bounds = array<i64: 16, 32>}, {transform_indices = @transform_1, window_bounds = array<i64: 16, 4>}, {transform_indices = @transform_2, window_bounds = array<i64: 16, 32>}, {transform_indices = @transform_3, window_bounds = array<i64: 1, 32, 128>}, {transform_indices = @transform_4, window_bounds = array<i64: 1, 1, 128>}, {transform_indices = @transform_5, window_bounds = array<i64: 1, 32, 128>}, {transform_indices = @transform_6, window_bounds = array<i64: 1, 1, 128>}, {transform_indices = @transform_7, window_bounds = array<i64: 1, 128, 32>}, {transform_indices = @transform_8, window_bounds = array<i64: 1, 1, 32>}, {transform_indices = @transform_9, window_bounds = array<i64: 16, 32>}]} {
    %c0_i32 = arith.constant 0 : i32
    %0 = arith.cmpi eq, %arg1, %c0_i32 : i32
    %c0_i32_0 = arith.constant 0 : i32
    %1 = arith.cmpi eq, %arg2, %c0_i32_0 : i32
    %2 = arith.andi %0, %1 : i1
    %3 = arith.extui %2 : i1 to i32
    %c0_i32_1 = arith.constant 0 : i32
    %4 = arith.cmpi ne, %3, %c0_i32_1 : i32
    scf.if %4 {
      %c0_31 = arith.constant 0 : index
      %c0_32 = arith.constant 0 : index
      %46 = vector.load %arg5[%c0_31, %c0_32] : memref<16x32xf32, #tpu.memory_space<vmem>>, vector<16x32xf32>
      %c0_33 = arith.constant 0 : index
      %c0_34 = arith.constant 0 : index
      %47 = vector.load %arg13[%c0_33, %c0_34] : memref<16x32xf32, #tpu.memory_space<vmem>>, vector<16x32xf32>
      tpu.vector_store %arg13[%c0_33, %c0_34], %46 {strides = array<i32>} : memref<16x32xf32, #tpu.memory_space<vmem>>, vector<16x32xf32>,
    } else {
    }
    %c0_i32_2 = arith.constant 0 : i32
    %5 = arith.cmpi eq, %arg2, %c0_i32_2 : i32
    %6 = arith.extui %5 : i1 to i32
    %c0_i32_3 = arith.constant 0 : i32
    %7 = arith.cmpi ne, %6, %c0_i32_3 : i32
    scf.if %7 {
      %cst_31 = arith.constant 0.000000e+00 : f32
      %46 = vector.broadcast %cst_31 : f32 to vector<16x32xf32>
      %c0_32 = arith.constant 0 : index
      %c0_33 = arith.constant 0 : index
      %47 = vector.load %arg14[%c0_32, %c0_33] : memref<16x32xf32, #tpu.memory_space<vmem>>, vector<16x32xf32>
      tpu.vector_store %arg14[%c0_32, %c0_33], %46 {strides = array<i32>} : memref<16x32xf32, #tpu.memory_space<vmem>>, vector<16x32xf32>,
    } else {
    }
    %c0 = arith.constant 0 : index
    %c0_4 = arith.constant 0 : index
    %8 = vector.load %arg3[%c0, %c0_4] : memref<16x32xf32, #tpu.memory_space<vmem>>, vector<16x32xf32>
    %9 = arith.truncf %8 : vector<16x32xf32> to vector<16x32xbf16>
    %c0_5 = arith.constant 0 : index
    %c0_6 = arith.constant 0 : index
    %c0_7 = arith.constant 0 : index
    %10 = vector.load %arg6[%c0_5, %c0_6, %c0_7] : memref<1x32x128xbf16, #tpu.memory_space<vmem>>, vector<1x32x128xbf16>
    %11 = vector.shape_cast %10 : vector<1x32x128xbf16> to vector<32x128xbf16>
    %cst = arith.constant dense<0.000000e+00> : vector<16x128xf32>
    %12 = tpu.matmul %9, %11, %cst {dimension_numbers = #tpu.dot_dimension_numbers<[1], [0], [0], [1], [0, 0, 1, 1], [], []>} : vector<16x32xbf16>, vector<32x128xbf16>, vector<16x128xf32> -> vector<16x128xf32>
    %c0_8 = arith.constant 0 : index
    %c0_9 = arith.constant 0 : index
    %c0_10 = arith.constant 0 : index
    %13 = vector.load %arg7[%c0_8, %c0_9, %c0_10] : memref<1x1x128xf32, #tpu.memory_space<vmem>>, vector<1x1x128xf32>
    %14 = vector.shape_cast %13 : vector<1x1x128xf32> to vector<1x128xf32>
    %15 = vector.broadcast %14 : vector<1x128xf32> to vector<16x128xf32>
    %16 = arith.addf %12, %15 : vector<16x128xf32>
    %c0_11 = arith.constant 0 : index
    %c0_12 = arith.constant 0 : index
    %c0_13 = arith.constant 0 : index
    %17 = vector.load %arg8[%c0_11, %c0_12, %c0_13] : memref<1x32x128xbf16, #tpu.memory_space<vmem>>, vector<1x32x128xbf16>
    %18 = vector.shape_cast %17 : vector<1x32x128xbf16> to vector<32x128xbf16>
    %cst_14 = arith.constant dense<0.000000e+00> : vector<16x128xf32>
    %19 = tpu.matmul %9, %18, %cst_14 {dimension_numbers = #tpu.dot_dimension_numbers<[1], [0], [0], [1], [0, 0, 1, 1], [], []>} : vector<16x32xbf16>, vector<32x128xbf16>, vector<16x128xf32> -> vector<16x128xf32>
    %c0_15 = arith.constant 0 : index
    %c0_16 = arith.constant 0 : index
    %c0_17 = arith.constant 0 : index
    %20 = vector.load %arg9[%c0_15, %c0_16, %c0_17] : memref<1x1x128xf32, #tpu.memory_space<vmem>>, vector<1x1x128xf32>
    %21 = vector.shape_cast %20 : vector<1x1x128xf32> to vector<1x128xf32>
    %22 = vector.broadcast %21 : vector<1x128xf32> to vector<16x128xf32>
    %23 = arith.addf %19, %22 : vector<16x128xf32>
    %24 = arith.negf %23 : vector<16x128xf32>
    %25 = math.exp %24 : vector<16x128xf32>
    %cst_18 = arith.constant 1.000000e+00 : f32
    %26 = vector.broadcast %cst_18 : f32 to vector<16x128xf32>
    %27 = arith.addf %26, %25 : vector<16x128xf32>
    %28 = arith.divf %26, %27 : vector<16x128xf32>
    %29 = arith.mulf %23, %28 : vector<16x128xf32>
    %30 = arith.mulf %16, %29 : vector<16x128xf32>
    %31 = arith.truncf %30 : vector<16x128xf32> to vector<16x128xbf16>
    %c0_19 = arith.constant 0 : index
    %c0_20 = arith.constant 0 : index
    %32 = vector.load %arg14[%c0_19, %c0_20] : memref<16x32xf32, #tpu.memory_space<vmem>>, vector<16x32xf32>
    %c0_21 = arith.constant 0 : index
    %c0_22 = arith.constant 0 : index
    %c0_23 = arith.constant 0 : index
    %33 = vector.load %arg10[%c0_21, %c0_22, %c0_23] : memref<1x128x32xbf16, #tpu.memory_space<vmem>>, vector<1x128x32xbf16>
    %34 = vector.shape_cast %33 : vector<1x128x32xbf16> to vector<128x32xbf16>
    %cst_24 = arith.constant dense<0.000000e+00> : vector<16x32xf32>
    %35 = tpu.matmul %31, %34, %cst_24 {dimension_numbers = #tpu.dot_dimension_numbers<[1], [0], [0], [1], [0, 0, 1, 1], [], []>} : vector<16x128xbf16>, vector<128x32xbf16>, vector<16x32xf32> -> vector<16x32xf32>
    %36 = arith.addf %32, %35 : vector<16x32xf32>
    %c0_25 = arith.constant 0 : index
    %c0_26 = arith.constant 0 : index
    %37 = vector.load %arg14[%c0_25, %c0_26] : memref<16x32xf32, #tpu.memory_space<vmem>>, vector<16x32xf32>
    tpu.vector_store %arg14[%c0_25, %c0_26], %36 {strides = array<i32>} : memref<16x32xf32, #tpu.memory_space<vmem>>, vector<16x32xf32>,
    %c0_i32_27 = arith.constant 0 : i32
    %38 = arith.cmpi eq, %arg2, %c0_i32_27 : i32
    %39 = arith.extui %38 : i1 to i32
    %c0_i32_28 = arith.constant 0 : i32
    %40 = arith.cmpi ne, %39, %c0_i32_28 : i32
    scf.if %40 {
      %c0_31 = arith.constant 0 : index
      %c0_32 = arith.constant 0 : index
      %46 = vector.load %arg4[%c0_31, %c0_32] : memref<16x4xf32, #tpu.memory_space<vmem>>, vector<16x4xf32>
      %47 = tpu.iota {dimensions = array<i32: 1>} : vector<16x4xi32>
      %48 = vector.broadcast %arg1 : i32 to vector<16x4xi32>
      %49 = arith.cmpi eq, %47, %48 : vector<16x4xi32>
      %cst_33 = arith.constant 0.000000e+00 : f32
      %50 = vector.broadcast %cst_33 : f32 to vector<16x4xf32>
      %51 = arith.select %49, %46, %50 : vector<16x4xi1>, vector<16x4xf32>
      %cst_34 = arith.constant dense<0.000000e+00> : vector<16xf32>
      %52 = vector.multi_reduction <add>, %51, %cst_34 [1] : vector<16x4xf32> to vector<16xf32>
      %53 = vector.shape_cast %52 : vector<16xf32> to vector<16x1xf32>
      %c0_35 = arith.constant 0 : index
      %c0_36 = arith.constant 0 : index
      %54 = vector.load %arg13[%c0_35, %c0_36] : memref<16x32xf32, #tpu.memory_space<vmem>>, vector<16x32xf32>
      %c0_37 = arith.constant 0 : index
      %c0_38 = arith.constant 0 : index
      %55 = vector.load %arg14[%c0_37, %c0_38] : memref<16x32xf32, #tpu.memory_space<vmem>>, vector<16x32xf32>
      %c0_39 = arith.constant 0 : index
      %c0_40 = arith.constant 0 : index
      %c0_41 = arith.constant 0 : index
      %56 = vector.load %arg11[%c0_39, %c0_40, %c0_41] : memref<1x1x32xf32, #tpu.memory_space<vmem>>, vector<1x1x32xf32>
      %57 = vector.shape_cast %56 : vector<1x1x32xf32> to vector<1x32xf32>
      %58 = vector.broadcast %57 : vector<1x32xf32> to vector<16x32xf32>
      %59 = arith.addf %55, %58 : vector<16x32xf32>
      %60 = vector.broadcast %53 : vector<16x1xf32> to vector<16x32xf32>
      %61 = arith.mulf %60, %59 : vector<16x32xf32>
      %62 = arith.addf %54, %61 : vector<16x32xf32>
      %c0_42 = arith.constant 0 : index
      %c0_43 = arith.constant 0 : index
      %63 = vector.load %arg13[%c0_42, %c0_43] : memref<16x32xf32, #tpu.memory_space<vmem>>, vector<16x32xf32>
      tpu.vector_store %arg13[%c0_42, %c0_43], %62 {strides = array<i32>} : memref<16x32xf32, #tpu.memory_space<vmem>>, vector<16x32xf32>,
    } else {
    }
    %c3_i32 = arith.constant 3 : i32
    %41 = arith.cmpi eq, %arg1, %c3_i32 : i32
    %c0_i32_29 = arith.constant 0 : i32
    %42 = arith.cmpi eq, %arg2, %c0_i32_29 : i32
    %43 = arith.andi %41, %42 : i1
    %44 = arith.extui %43 : i1 to i32
    %c0_i32_30 = arith.constant 0 : i32
    %45 = arith.cmpi ne, %44, %c0_i32_30 : i32
    scf.if %45 {
      %c0_31 = arith.constant 0 : index
      %c0_32 = arith.constant 0 : index
      %46 = vector.load %arg13[%c0_31, %c0_32] : memref<16x32xf32, #tpu.memory_space<vmem>>, vector<16x32xf32>
      %c0_33 = arith.constant 0 : index
      %c0_34 = arith.constant 0 : index
      %47 = vector.load %arg12[%c0_33, %c0_34] : memref<16x32xf32, #tpu.memory_space<vmem>>, vector<16x32xf32>
      tpu.vector_store %arg12[%c0_33, %c0_34], %46 {strides = array<i32>} : memref<16x32xf32, #tpu.memory_space<vmem>>, vector<16x32xf32>,
    } else {
    }
    return
  }
  func.func @transform_0(%arg0: i32, %arg1: i32, %arg2: i32) -> (i32, i32) {
    %c0_i32 = arith.constant 0 : i32
    %c0_i32_0 = arith.constant 0 : i32
    return %arg0, %c0_i32 : i32, i32
  }
  func.func @transform_1(%arg0: i32, %arg1: i32, %arg2: i32) -> (i32, i32) {
    %c0_i32 = arith.constant 0 : i32
    %c0_i32_0 = arith.constant 0 : i32
    return %arg0, %c0_i32 : i32, i32
  }
  func.func @transform_2(%arg0: i32, %arg1: i32, %arg2: i32) -> (i32, i32) {
    %c0_i32 = arith.constant 0 : i32
    %c0_i32_0 = arith.constant 0 : i32
    return %arg0, %c0_i32 : i32, i32
  }
  func.func @transform_3(%arg0: i32, %arg1: i32, %arg2: i32) -> (i32, i32, i32) {
    %c0_i32 = arith.constant 0 : i32
    %c0_i32_0 = arith.constant 0 : i32
    return %arg1, %c0_i32, %arg2 : i32, i32, i32
  }
  func.func @transform_4(%arg0: i32, %arg1: i32, %arg2: i32) -> (i32, i32, i32) {
    %c0_i32 = arith.constant 0 : i32
    %c0_i32_0 = arith.constant 0 : i32
    return %arg1, %c0_i32, %arg2 : i32, i32, i32
  }
  func.func @transform_5(%arg0: i32, %arg1: i32, %arg2: i32) -> (i32, i32, i32) {
    %c0_i32 = arith.constant 0 : i32
    %c0_i32_0 = arith.constant 0 : i32
    return %arg1, %c0_i32, %arg2 : i32, i32, i32
  }
  func.func @transform_6(%arg0: i32, %arg1: i32, %arg2: i32) -> (i32, i32, i32) {
    %c0_i32 = arith.constant 0 : i32
    %c0_i32_0 = arith.constant 0 : i32
    return %arg1, %c0_i32, %arg2 : i32, i32, i32
  }
  func.func @transform_7(%arg0: i32, %arg1: i32, %arg2: i32) -> (i32, i32, i32) {
    %c0_i32 = arith.constant 0 : i32
    %c0_i32_0 = arith.constant 0 : i32
    return %arg1, %arg2, %c0_i32 : i32, i32, i32
  }
  func.func @transform_8(%arg0: i32, %arg1: i32, %arg2: i32) -> (i32, i32, i32) {
    %c0_i32 = arith.constant 0 : i32
    %c0_i32_0 = arith.constant 0 : i32
    %c0_i32_1 = arith.constant 0 : i32
    return %arg1, %c0_i32, %c0_i32_0 : i32, i32, i32
  }
  func.func @transform_9(%arg0: i32, %arg1: i32, %arg2: i32) -> (i32, i32) {
    %c0_i32 = arith.constant 0 : i32
    %c0_i32_0 = arith.constant 0 : i32
    return %arg0, %c0_i32 : i32, i32
  }
}

module attributes {stable_mosaic.version = 11 : i64} {
  func.func @_lmhead_ce_kernel(%arg0: i32, %arg1: i32, %arg2: memref<16x32xf32, #tpu.memory_space<vmem>>, %arg3: memref<128x32xbf16, #tpu.memory_space<vmem>>, %arg4: memref<16x1xi32, #tpu.memory_space<vmem>>, %arg5: memref<16x128xf32, #tpu.memory_space<vmem>>, %arg6: memref<16x1xf32, #tpu.memory_space<vmem>>, %arg7: memref<16x1xf32, #tpu.memory_space<vmem>>, %arg8: memref<16x1xf32, #tpu.memory_space<vmem>>, %arg9: memref<16x1xf32, #tpu.memory_space<vmem>>) attributes {dimension_semantics = [#tpu.dimension_semantics<parallel>, #tpu.dimension_semantics<arbitrary>], iteration_bounds = array<i64: 1, 1>, scalar_prefetch = 0 : i64, scratch_operands = 3 : i64, tpu.core_type = #tpu.core_type<tc>, window_params = [{transform_indices = @transform_0, window_bounds = array<i64: 16, 32>}, {transform_indices = @transform_1, window_bounds = array<i64: 128, 32>}, {transform_indices = @transform_2, window_bounds = array<i64: 16, 1>}, {transform_indices = @transform_3, window_bounds = array<i64: 16, 128>}, {transform_indices = @transform_4, window_bounds = array<i64: 16, 1>}]} {
    %c0_i32 = arith.constant 0 : i32
    %0 = arith.cmpi eq, %arg1, %c0_i32 : i32
    %1 = arith.extui %0 : i1 to i32
    %c0_i32_0 = arith.constant 0 : i32
    %2 = arith.cmpi ne, %1, %c0_i32_0 : i32
    scf.if %2 {
      %cst_26 = arith.constant -1.000000e+30 : f32
      %41 = vector.broadcast %cst_26 : f32 to vector<16x1xf32>
      %c0_27 = arith.constant 0 : index
      %c0_28 = arith.constant 0 : index
      %42 = vector.load %arg7[%c0_27, %c0_28] : memref<16x1xf32, #tpu.memory_space<vmem>>, vector<16x1xf32>
      tpu.vector_store %arg7[%c0_27, %c0_28], %41 {strides = array<i32>} : memref<16x1xf32, #tpu.memory_space<vmem>>, vector<16x1xf32>,
      %cst_29 = arith.constant 0.000000e+00 : f32
      %43 = vector.broadcast %cst_29 : f32 to vector<16x1xf32>
      %c0_30 = arith.constant 0 : index
      %c0_31 = arith.constant 0 : index
      %44 = vector.load %arg8[%c0_30, %c0_31] : memref<16x1xf32, #tpu.memory_space<vmem>>, vector<16x1xf32>
      tpu.vector_store %arg8[%c0_30, %c0_31], %43 {strides = array<i32>} : memref<16x1xf32, #tpu.memory_space<vmem>>, vector<16x1xf32>,
      %cst_32 = arith.constant 0.000000e+00 : f32
      %45 = vector.broadcast %cst_32 : f32 to vector<16x1xf32>
      %c0_33 = arith.constant 0 : index
      %c0_34 = arith.constant 0 : index
      %46 = vector.load %arg9[%c0_33, %c0_34] : memref<16x1xf32, #tpu.memory_space<vmem>>, vector<16x1xf32>
      tpu.vector_store %arg9[%c0_33, %c0_34], %45 {strides = array<i32>} : memref<16x1xf32, #tpu.memory_space<vmem>>, vector<16x1xf32>,
    } else {
    }
    %c0 = arith.constant 0 : index
    %c0_1 = arith.constant 0 : index
    %3 = vector.load %arg2[%c0, %c0_1] : memref<16x32xf32, #tpu.memory_space<vmem>>, vector<16x32xf32>
    %4 = arith.truncf %3 : vector<16x32xf32> to vector<16x32xbf16>
    %c0_2 = arith.constant 0 : index
    %c0_3 = arith.constant 0 : index
    %5 = vector.load %arg3[%c0_2, %c0_3] : memref<128x32xbf16, #tpu.memory_space<vmem>>, vector<128x32xbf16>
    %cst = arith.constant dense<0.000000e+00> : vector<16x128xf32>
    %6 = tpu.matmul %4, %5, %cst {dimension_numbers = #tpu.dot_dimension_numbers<[1], [1], [0], [0], [0, 0, 1, 0], [], []>} : vector<16x32xbf16>, vector<128x32xbf16>, vector<16x128xf32> -> vector<16x128xf32>
    %c0_4 = arith.constant 0 : index
    %c0_5 = arith.constant 0 : index
    %7 = vector.load %arg5[%c0_4, %c0_5] : memref<16x128xf32, #tpu.memory_space<vmem>>, vector<16x128xf32>
    tpu.vector_store %arg5[%c0_4, %c0_5], %6 {strides = array<i32>} : memref<16x128xf32, #tpu.memory_space<vmem>>, vector<16x128xf32>,
    %c0_6 = arith.constant 0 : index
    %c0_7 = arith.constant 0 : index
    %8 = vector.load %arg7[%c0_6, %c0_7] : memref<16x1xf32, #tpu.memory_space<vmem>>, vector<16x1xf32>
    %cst_8 = arith.constant dense<0xFF800000> : vector<16xf32>
    %9 = vector.multi_reduction <maximumf>, %6, %cst_8 [1] : vector<16x128xf32> to vector<16xf32>
    %10 = vector.shape_cast %9 : vector<16xf32> to vector<16x1xf32>
    %11 = arith.maximumf %8, %10 : vector<16x1xf32>
    %12 = arith.subf %8, %11 : vector<16x1xf32>
    %13 = math.exp %12 : vector<16x1xf32>
    %c0_9 = arith.constant 0 : index
    %c0_10 = arith.constant 0 : index
    %14 = vector.load %arg8[%c0_9, %c0_10] : memref<16x1xf32, #tpu.memory_space<vmem>>, vector<16x1xf32>
    %15 = arith.mulf %13, %14 : vector<16x1xf32>
    %16 = vector.broadcast %11 : vector<16x1xf32> to vector<16x128xf32>
    %17 = arith.subf %6, %16 : vector<16x128xf32>
    %18 = math.exp %17 : vector<16x128xf32>
    %cst_11 = arith.constant dense<0.000000e+00> : vector<16xf32>
    %19 = vector.multi_reduction <add>, %18, %cst_11 [1] : vector<16x128xf32> to vector<16xf32>
    %20 = vector.shape_cast %19 : vector<16xf32> to vector<16x1xf32>
    %21 = arith.addf %15, %20 : vector<16x1xf32>
    %c0_12 = arith.constant 0 : index
    %c0_13 = arith.constant 0 : index
    %22 = vector.load %arg8[%c0_12, %c0_13] : memref<16x1xf32, #tpu.memory_space<vmem>>, vector<16x1xf32>
    tpu.vector_store %arg8[%c0_12, %c0_13], %21 {strides = array<i32>} : memref<16x1xf32, #tpu.memory_space<vmem>>, vector<16x1xf32>,
    %c0_14 = arith.constant 0 : index
    %c0_15 = arith.constant 0 : index
    %23 = vector.load %arg7[%c0_14, %c0_15] : memref<16x1xf32, #tpu.memory_space<vmem>>, vector<16x1xf32>
    tpu.vector_store %arg7[%c0_14, %c0_15], %11 {strides = array<i32>} : memref<16x1xf32, #tpu.memory_space<vmem>>, vector<16x1xf32>,
    %c128_i32 = arith.constant 128 : i32
    %24 = arith.muli %arg1, %c128_i32 : i32
    %25 = tpu.iota {dimensions = array<i32: 1>} : vector<16x128xi32>
    %26 = vector.broadcast %24 : i32 to vector<16x128xi32>
    %27 = arith.addi %26, %25 : vector<16x128xi32>
    %c0_16 = arith.constant 0 : index
    %c0_17 = arith.constant 0 : index
    %28 = vector.load %arg9[%c0_16, %c0_17] : memref<16x1xf32, #tpu.memory_space<vmem>>, vector<16x1xf32>
    %c0_18 = arith.constant 0 : index
    %c0_19 = arith.constant 0 : index
    %29 = vector.load %arg4[%c0_18, %c0_19] : memref<16x1xi32, #tpu.memory_space<vmem>>, vector<16x1xi32>
    %30 = vector.broadcast %29 : vector<16x1xi32> to vector<16x128xi32>
    %31 = arith.cmpi eq, %27, %30 : vector<16x128xi32>
    %cst_20 = arith.constant 0.000000e+00 : f32
    %32 = vector.broadcast %cst_20 : f32 to vector<16x128xf32>
    %33 = arith.select %31, %6, %32 : vector<16x128xi1>, vector<16x128xf32>
    %cst_21 = arith.constant dense<0.000000e+00> : vector<16xf32>
    %34 = vector.multi_reduction <add>, %33, %cst_21 [1] : vector<16x128xf32> to vector<16xf32>
    %35 = vector.shape_cast %34 : vector<16xf32> to vector<16x1xf32>
    %36 = arith.addf %28, %35 : vector<16x1xf32>
    %c0_22 = arith.constant 0 : index
    %c0_23 = arith.constant 0 : index
    %37 = vector.load %arg9[%c0_22, %c0_23] : memref<16x1xf32, #tpu.memory_space<vmem>>, vector<16x1xf32>
    tpu.vector_store %arg9[%c0_22, %c0_23], %36 {strides = array<i32>} : memref<16x1xf32, #tpu.memory_space<vmem>>, vector<16x1xf32>,
    %c0_i32_24 = arith.constant 0 : i32
    %38 = arith.cmpi eq, %arg1, %c0_i32_24 : i32
    %39 = arith.extui %38 : i1 to i32
    %c0_i32_25 = arith.constant 0 : i32
    %40 = arith.cmpi ne, %39, %c0_i32_25 : i32
    scf.if %40 {
      %c0_26 = arith.constant 0 : index
      %c0_27 = arith.constant 0 : index
      %41 = vector.load %arg7[%c0_26, %c0_27] : memref<16x1xf32, #tpu.memory_space<vmem>>, vector<16x1xf32>
      %c0_28 = arith.constant 0 : index
      %c0_29 = arith.constant 0 : index
      %42 = vector.load %arg8[%c0_28, %c0_29] : memref<16x1xf32, #tpu.memory_space<vmem>>, vector<16x1xf32>
      %43 = math.log %42 : vector<16x1xf32>
      %44 = arith.addf %41, %43 : vector<16x1xf32>
      %c0_30 = arith.constant 0 : index
      %c0_31 = arith.constant 0 : index
      %45 = vector.load %arg9[%c0_30, %c0_31] : memref<16x1xf32, #tpu.memory_space<vmem>>, vector<16x1xf32>
      %46 = arith.subf %44, %45 : vector<16x1xf32>
      %c0_32 = arith.constant 0 : index
      %c0_33 = arith.constant 0 : index
      %47 = vector.load %arg6[%c0_32, %c0_33] : memref<16x1xf32, #tpu.memory_space<vmem>>, vector<16x1xf32>
      tpu.vector_store %arg6[%c0_32, %c0_33], %46 {strides = array<i32>} : memref<16x1xf32, #tpu.memory_space<vmem>>, vector<16x1xf32>,
    } else {
    }
    return
  }
  func.func @transform_0(%arg0: i32, %arg1: i32) -> (i32, i32) {
    %c0_i32 = arith.constant 0 : i32
    %c0_i32_0 = arith.constant 0 : i32
    return %arg0, %c0_i32 : i32, i32
  }
  func.func @transform_1(%arg0: i32, %arg1: i32) -> (i32, i32) {
    %c0_i32 = arith.constant 0 : i32
    %c0_i32_0 = arith.constant 0 : i32
    return %arg1, %c0_i32 : i32, i32
  }
  func.func @transform_2(%arg0: i32, %arg1: i32) -> (i32, i32) {
    %c0_i32 = arith.constant 0 : i32
    %c0_i32_0 = arith.constant 0 : i32
    return %arg0, %c0_i32 : i32, i32
  }
  func.func @transform_3(%arg0: i32, %arg1: i32) -> (i32, i32) {
    %c0_i32 = arith.constant 0 : i32
    return %arg0, %arg1 : i32, i32
  }
  func.func @transform_4(%arg0: i32, %arg1: i32) -> (i32, i32) {
    %c0_i32 = arith.constant 0 : i32
    %c0_i32_0 = arith.constant 0 : i32
    return %arg0, %c0_i32 : i32, i32
  }
}

</mosaic_0001>

<bundles_post_ra>
// kernel: run.16
= control target key start
LH: loop header
LB: loop body
LE: loop exit
PB: predicated region body
PF: predicated region fallthrough
CT: control target
= control target key end

     0   :  { %vm22_vm0 = vcmask 261120   ;;  %v138_v0 = vmov 0.0   ;;  %vm139_vm1 = vmmov 0   ;;  %s199_s1 = inlined_call_operand.vmem [shape: bf16[32,32], index: 1, kind: input, shape index: {}]   ;;  %s200_s0 = inlined_call_operand.vmem [shape: f32[16,32], index: 0, kind: input, shape index: {}]   ;;  %s201_s2 = inlined_call_operand.vmem [shape: f32[1,32], index: 2, kind: input, shape index: {}]   ;;  %s202_s3 = inlined_call_operand.vmem [shape: f32[16,32], index: 3, kind: input, shape index: {}]   ;;  %s203_s4 = inlined_call_operand.vmem [shape: f32[16,32], index: 4, kind: output, shape index: {}]  }
   0x1   :  { %126 = vmatprep.subr.bf16.mxu0 %v138_v0  ;;  %v136_v1 = vld [vmem:[%s199_s1] sm:$0xff]   ;;  %130 = vmatprep.mubr.msk.bf16.mxu0 %vm139_vm1, %v138_v0  ;;  %23 = vst.msk [vmem:[#allocation2] sm:$0xff] %vm22_vm0, %v138_v0  ;;  %24 = vst.msk [vmem:[#allocation2 + $0x8] sm:$0xff] %vm22_vm0, %v138_v0  ;;  %v137_v2 = vld [vmem:[%s199_s1 + $0x8] sm:$0xff]  }
   0x2   :  { %127 = vmatpush3.bf16.msra.mxu0 %v136_v1  ;;  %v27_v3 = vld [vmem:[%s200_s0] sm:$0xff]  ;;  %v28_v4 = vld [vmem:[%s200_s0 + $0x8] sm:$0xff] }
   0x3   :  { %128 = vmatprep.subr.bf16.mxu0 %v138_v0  ;;  %v29_v5 = vpack.c.bf16 %v28_v4, %v27_v3  ;;  %v122_v14 = vld [vmem:[%s201_s2] ss:$0 sm:$0xff]  ;;  %v110_v19 = vld [vmem:[%s202_s3 + $0x8] sm:$0xff] }
   0x4   :  { %v109_v16 = vld [vmem:[%s202_s3] sm:$0xff] }
   0x6   :  { %129 = vmatpush3.bf16.msra.mxu0 %v137_v2 }
   0x8   :  { %v25_v6 = vld [vmem:[#allocation2] sm:$0xff]  ;;  %v26_v8 = vld [vmem:[#allocation2 + $0x8] sm:$0xff] }
   0x9   :  { %131 = vmatmul.mubr.msk.bf16.vlgmr.msra.gmra.mrb[0].mxu0 %vm22_vm0, %v29_v5 }
  0xdc   :  { %v84_v7 = vpop.f32.mrb[0].mxu0 }
  0xdd   :  { %v91_v9 = vadd.f32 %v84_v7, %v25_v6  ;;  %v132_v10 = vpop.f32.mrb[1].mxu0 }
  0xde   :  { %v87_v11 = vpop.f32.mrb[2].mxu0 }
  0xdf   :  { %93 = vst.msk [vmem:[#allocation2] sm:$0xff] %vm22_vm0, %v91_v9  ;;  %v92_v12 = vadd.f32 %v87_v11, %v26_v8  ;;  %v133_v13 = vpop.f32.mrb[3].mxu0 }
  0xe1   :  { %94 = vst.msk [vmem:[#allocation2 + $0x8] sm:$0xff] %vm22_vm0, %v92_v12 }
  0xe6   :  { %v98_v15 = vld [vmem:[#allocation2] sm:$0xff] }
  0xe7   :  { %v107_v17 = vadd.f32 %v122_v14, %v98_v15 }
  0xe8   :  { %v99_v18 = vld [vmem:[#allocation2 + $0x8] sm:$0xff] }
  0xe9   :  { %v111_v20 = vadd.f32 %v109_v16, %v107_v17  ;;  %v108_v21 = vadd.f32 %v122_v14, %v99_v18 }
  0xeb   :  { %113 = vst.msk [vmem:[%s203_s4] sm:$0xff] %vm22_vm0, %v111_v20  ;;  %v112_v22 = vadd.f32 %v110_v19, %v108_v21 }
  0xed   :  { %114 = vst.msk [vmem:[%s203_s4 + $0x8] sm:$0xff] %vm22_vm0, %v112_v22 }

// kernel: run.17
= control target key start
LH: loop header
LB: loop body
LE: loop exit
PB: predicated region body
PF: predicated region fallthrough
CT: control target
= control target key end

     0   :  { %vm16_vm0 = vcmask 261120   ;;  %s118_s0 = inlined_call_operand.vmem [shape: f32[16,32], index: 0, kind: input, shape index: {}]   ;;  %s119_s1 = inlined_call_operand.vmem [shape: f32[1,32], index: 1, kind: input, shape index: {}]   ;;  %s120_s2 = inlined_call_operand.vmem [shape: f32[1,32], index: 2, kind: input, shape index: {}]   ;;  %s121_s3 = inlined_call_operand.vmem [shape: f32[16,32], index: 3, kind: output, shape index: {}]  }
   0x1   :  { %v14_v0 = vld [vmem:[%s118_s0] sm:$0xff]  ;;  %v15_v1 = vld [vmem:[%s118_s0 + $0x8] sm:$0xff] }
   0x2   :  { %v17_v2 = vsel %vm16_vm0, %v14_v0, 0.0  ;;  %v20_v3 = vsel %vm16_vm0, %v15_v1, 0.0  ;;  %v68_v21 = vld [vmem:[%s119_s1] ss:$0 sm:$0xff] }
   0x3   :  { %18 = vadd.xlane.f32.xlu0 %v17_v2  ;;  %v69_v23 = vld [vmem:[%s120_s2] ss:$0 sm:$0xff] }
   0x7   :  { %21 = vadd.xlane.f32.xlu0 %v20_v3 }
  0x90   :  { %v19_v4 = vpop.xlane.xlu0 %18 }
  0x91   :  { %v24_v5 = vmul.f32 0.03125, %v19_v4 }
  0x93   :  { %v26_v6 = vsub.f32 %v14_v0, %v24_v5 }
  0x94   :  { %v22_v7 = vpop.xlane.xlu0 %21 }
  0x95   :  { %v25_v8 = vmul.f32 0.03125, %v22_v7  ;;  %v28_v9 = vmul.f32 %v26_v6, %v26_v6 }
  0x97   :  { %v27_v10 = vsub.f32 %v15_v1, %v25_v8  ;;  %v30_v11 = vsel %vm16_vm0, %v28_v9, 0.0 }
  0x98   :  { %31 = vadd.xlane.f32.xlu1 %v30_v11 }
  0x99   :  { %v29_v12 = vmul.f32 %v27_v10, %v27_v10 }
  0x9b   :  { %v33_v13 = vsel %vm16_vm0, %v29_v12, 0.0 }
  0x9c   :  { %34 = vadd.xlane.f32.xlu1 %v33_v13 }
 0x125   :  { %v32_v14 = vpop.xlane.xlu1 %31 }
 0x126   :  { %v36_v15 = vmul.f32 0.03125, %v32_v14 }
 0x128   :  { %v38_v16 = vadd.f32 1e-05, %v36_v15 }
 0x129   :  { %v35_v17 = vpop.xlane.xlu1 %34 }
 0x12a   :  { %70 = vrsqrt.f32 %v38_v16  ;;  %v37_v18 = vmul.f32 0.03125, %v35_v17 }
 0x12c   :  { %v39_v19 = vadd.f32 1e-05, %v37_v18 }
 0x12e   :  { %72 = vrsqrt.f32 %v39_v19 }
 0x134   :  { %v71_v20 = vpop.eup %70 }
 0x135   :  { %v42_v22 = vmul.f32 %v71_v20, %v26_v6 }
 0x137   :  { %v51_v24 = vmul.f32 %v68_v21, %v42_v22 }
 0x138   :  { %v73_v25 = vpop.eup %72 }
 0x139   :  { %v60_v26 = vadd.f32 %v69_v23, %v51_v24  ;;  %v43_v27 = vmul.f32 %v73_v25, %v27_v10 }
 0x13b   :  { %62 = vst.msk [vmem:[%s121_s3] sm:$0xff] %vm16_vm0, %v60_v26  ;;  %v52_v28 = vmul.f32 %v68_v21, %v43_v27 }
 0x13d   :  { %v61_v29 = vadd.f32 %v69_v23, %v52_v28 }
 0x13f   :  { %63 = vst.msk [vmem:[%s121_s3 + $0x8] sm:$0xff] %vm16_vm0, %v61_v29 }

// kernel: run.15
= control target key start
LH: loop header
LB: loop body
LE: loop exit
PB: predicated region body
PF: predicated region fallthrough
CT: control target
= control target key end

     0   :  { %s793_s12 = smov 0   ;;  %s795_s13 = smov 0   ;;  %s868_s0 = inlined_call_operand.vmem [shape: f32[2,4,8,8], index: 0, kind: input, shape index: {}]   ;;  %s869_s1 = inlined_call_operand.vmem [shape: f32[2,4,8,8], index: 1, kind: input, shape index: {}]   ;;  %s870_s2 = inlined_call_operand.vmem [shape: f32[2,4,8,8], index: 2, kind: input, shape index: {}]   ;;  %s871_s3 = inlined_call_operand.vmem [shape: f32[2,4,8,8], index: 3, kind: output, shape index: {}]  }
   0x1   :  { %s797_s14 = smov 0   ;;  %s799_s15 = smov 0  }
   0x2   :  { %s801_s16 = smov 0  }
   0x3 LB: > { %s35_s17 = sadd.s32 1, %s759_s14  ;;  %s39_s18 = sadd.s32 1, %s763_s15  ;;  %s767_s16 = sphi %s801_s16, %s13_s16   ;;  %s763_s15 = sphi %s799_s15, %s875_s15   ;;  %s759_s14 = sphi %s797_s14, %s874_s14   ;;  %s755_s13 = sphi %s795_s13, %s873_s13   ;;  %s751_s12 = sphi %s793_s12, %s872_s12  }
   0x4   : > { %p37_p0 = scmp.ge.s32.totalorder %s35_s17, 4  ;;  %p648_p1 = scmp.ge.s32.totalorder %s767_s16, 1 }
   0x5   : > { %p217_p2 = scmp.lt.s32.totalorder %s767_s16, 9 }
   0x6   : > { %s877_s17 = smov (%p37_p0, %s35_s17), 0  ;;  %s879_s18 = smov (!%p37_p0, %s39_s18), %s763_s15 }
   0x7   : > { %p218_p3 = pnand %p648_p1, %p217_p2  ;;  %p41_p4 = scmp.ge.s32.totalorder %s879_s18, 2 }
   0x8   : > { %p275_p5 = scmp.lt.s32.totalorder (!%p218_p3), %s755_s13, 1  ;;  %p277_p6 = scmp.lt.s32.totalorder (!%p218_p3), %s751_s12, 3  ;;  %vm327_vm0 = vcmask (!%p218_p3), 64512   ;;  %v769_v0 = vmov (!%p218_p3), 0.0   ;;  %vm770_vm1 = vmmov (!%p218_p3), 0   ;;  %vm324_vm2 = vcmask (!%p218_p3), 7168  }
   0x9   : > { %s881_s18 = smov (%p41_p4, %s879_s18), 0  ;;  %221 = sbr.rel (%p218_p3) target bundleno = 828 (0x33c), region = 32 }
   0xa   : > { %665 = vmatprep.subr.bf16.mxu0 (!%p218_p3), %v769_v0  ;;  %328 = vst.msk [vmem:[#allocation4] sm:$0xff] (!%p218_p3), %vm327_vm0, %v769_v0  ;;  %667 = vmatprep.mubr.msk.bf16.mxu0 (!%p218_p3), %vm770_vm1, %v769_v0  ;;  %v771_v7 = vmov (!%p218_p3), -1e+30   ;;  %v391_v8 = vlaneseq (!%p218_p3)  ;;  %v772_v17 = vmov (!%p218_p3), 0   ;;  %vm436_vm4 = vcmask (!%p218_p3), 1043456  }
   0xb   : > { %671 = vmatprep.subr.bf16.mxu1 (!%p218_p3), %v769_v0  ;;  %673 = vmatprep.mubr.msk.bf16.mxu1 (!%p218_p3), %vm770_vm1, %v769_v0  ;;  %325 = vst.msk [vmem:[#allocation2] sm:$0xff] (!%p218_p3), %vm324_vm2, %v771_v7  ;;  %326 = vst.msk [vmem:[#allocation3] sm:$0xff] (!%p218_p3), %vm324_vm2, %v769_v0 }
   0xc   : > { %v392_v9 = vshrl.u32 (!%p218_p3), %v391_v8, 7  ;;  %v396_v10 = vand.u32 (!%p218_p3), 127, %v391_v8  ;;  %721 = vset.pattern.permute.xlu0 (!%p218_p3), %v772_v17  ;;  %722 = vset.pattern.permute.xlu1 (!%p218_p3), %v772_v17 }
   0xe   : > { %vm399_vm3 = vcmp.le.s32.totalorder (!%p218_p3), %v396_v10, %v392_v9 }
  0x10   : > { %s883_s13 = smov (!%p275_p5, %s755_s13), 1  ;;  %s885_s12 = smov (!%p277_p6, %s751_s12), 3 }
  0x11   : > { %s649_s19 = sshll.u32 %s883_s13, 2  ;;  %v425_v39 = vld [vmem:[#allocation4] sm:$0xff] }
  0x12   : > { %s283_s20 = sadd.s32 %s649_s19, %s885_s12  ;;  %v401_v18 = vld [vmem:[#allocation2] sm:$0xff]  ;;  %v417_v33 = vld [vmem:[#allocation3] sm:$0xff] }
  0x13   : > { %s824_s21 = sshll.u32 %s283_s20, 3 }
  0x14   : > { %s296_s24 = scalar_lea.vmem %s869_s1, %s824_s21  ;;  %s285_s27 = scalar_lea.vmem %s868_s0, %s824_s21 }
  0x15   : > { %v339_v1 = vld [vmem:[%s296_s24] sm:$0xff]  ;;  %s307_s30 = scalar_lea.vmem %s870_s2, %s824_s21  ;;  %s318_s6 = scalar_lea.vmem %s871_s3, %s824_s21 }
  0x16   : > { %v336_v2 = vld [vmem:[%s285_s27] sm:$0xff]  ;;  %v340_v3 = vpack.c.bf16 %v339_v1, %v339_v1 }
  0x17   : > { %v337_v5 = vmul.f32 0.35355338, %v336_v2  ;;  %v341_v22 = vld [vmem:[%s307_s30] sm:$0xff] }
  0x18   : > { %v348_v4 = vsel %vm327_vm0, %v340_v3, 0  ;;  %v342_v23 = vpack.c.bf16 %v341_v22, %v341_v22 }
  0x19   : > { %666 = vmatpush3.bf16.xpose.msra.mxu0 %v348_v4  ;;  %v338_v6 = vpack.c.bf16 %v337_v5, %v337_v5 }
  0x1a   : > { %v438_v24 = vsel %vm436_vm4, %v342_v23, 0 }
  0x1b   : > { %672 = vmatpush3.bf16.msra.mxu1 %v438_v24 }
  0x20   : > { %668 = vmatmul.mubr.msk.bf16.vlgmr.msra.gmra.mrb[0].mxu0 %vm327_vm0, %v338_v6 }
  0xf3   : > { %v384_v11 = vpop.f32.mrb[0].mxu0 }
  0xf4   : > { %v400_v12 = vsel %vm399_vm3, %v384_v11, -1e+30  ;;  %v669_v13 = vpop.f32.mrb[1].mxu0 }
  0xf5   : > { %v387_v14 = vpop.f32.mrb[2].mxu0  ;;  %v402_v15 = vsel %vm327_vm0, %v400_v12, -inf }
  0xf6   : > { %403 = vmax.xlane.f32.xlu0 %v402_v15  ;;  %v670_v16 = vpop.f32.mrb[3].mxu0 }
 0x183   : > { %v404_v19 = vpop.xlane.xlu0 %403 }
 0x184   : > { %v405_v20 = vmax.f32 %v401_v18, %v404_v19 }
 0x186   : > { %v406_v21 = vsub.f32 %v401_v18, %v405_v20  ;;  %482 = vst.msk [vmem:[#allocation2] sm:$0xff] %vm324_vm2, %v405_v20  ;;  %411 = vperm.xlu0 %721, %v405_v20  }
 0x188   : > { %v407_v31 = vmul.f32 1.442695, %v406_v21 }
 0x205   : > { %v412_v25 = vpop.permute.xlu0 %411 }
 0x206   : > { %v414_v26 = vsub.f32 %v400_v12, %v412_v25 }
 0x208   : > { %v415_v27 = vmul.f32 1.442695, %v414_v26 }
 0x20a   : > { %723 = vpow2.f32 %v415_v27 }
 0x20b   : > { %725 = vpow2.f32 %v407_v31 }
 0x214   : > { %v724_v28 = vpop.eup %723 }
 0x215   : > { %v419_v29 = vsel %vm327_vm0, %v724_v28, 0.0  ;;  %v432_v30 = vpack.c.bf16 %v724_v28, %v724_v28  ;;  %v726_v32 = vpop.eup %725 }
 0x216   : > { %420 = vadd.xlane.f32.xlu1 %v419_v29  ;;  %v418_v34 = vmul.f32 %v726_v32, %v417_v33 }
 0x217   : > { %674 = vmatmul.mubr.msk.bf16.vlgmr.msra.gmra.mrb[0].mxu1 %vm327_vm0, %v432_v30 }
 0x227   : > { %428 = vperm.xlu1 %722, %v726_v32  }
 0x2a3   : > { %v421_v35 = vpop.xlane.xlu1 %420 }
 0x2a4   : > { %v422_v36 = vadd.f32 %v421_v35, %v418_v34 }
 0x2a6   : > { %424 = vst.msk [vmem:[#allocation3] sm:$0xff] %vm324_vm2, %v422_v36 }
 0x2a7   : > { %v429_v40 = vpop.permute.xlu1 %428 }
 0x2a8   : > { %v431_v41 = vmul.f32 %v429_v40, %v425_v39 }
 0x2ad   : > { %v487_v37 = vld [vmem:[#allocation3] sm:$0xff] }
 0x2ae   : > { %727 = vrcp.f32 %v487_v37 }
 0x2b8   : > { %v728_v38 = vpop.eup %727 }
 0x2b9   : > { %491 = vperm.xlu1 %722, %v728_v38  }
 0x2ea   : > { %v474_v42 = vpop.f32.mrb[0].mxu1 }
 0x2eb   : > { %v480_v43 = vadd.f32 %v474_v42, %v431_v41  ;;  %v675_v44 = vpop.f32.mrb[1].mxu1 }
 0x2ec   : > { %v477_v45 = vpop.f32.mrb[2].mxu1 }
 0x2ed   : > { %481 = vst.msk [vmem:[#allocation4] sm:$0xff] %vm327_vm0, %v480_v43  ;;  %v676_v46 = vpop.f32.mrb[3].mxu1 }
 0x2f4   : > { %v486_v47 = vld [vmem:[#allocation4] sm:$0xff] }
 0x338   : > { %v492_v48 = vpop.permute.xlu1 %491 }
 0x339   : > { %v494_v49 = vmul.f32 %v492_v48, %v486_v47 }
 0x33b   : > { %496 = vst.msk [vmem:[%s318_s6] sm:$0xff] %vm327_vm0, %v494_v49 }
 0x33c PF: > { %s13_s16 = sadd.s32 1, %s767_s16   ;;  %s872_s12 = smov %s759_s14 }
 0x33d   : > { %p10_p7 = scmp.ge.s32.totalorder %s13_s16, 10   ;;  %s873_s13 = smov %s763_s15 }
 0x33e   : > { %s874_s14 = smov %s877_s17  ;;  %s875_s15 = smov %s881_s18 }
 0x33f   :  { %12 = sbr.rel (!%p10_p7) target bundleno = 3 (0x3), region = 80 }

// kernel: run.14
= control target key start
LH: loop header
LB: loop body
LE: loop exit
PB: predicated region body
PF: predicated region fallthrough
CT: control target
= control target key end

     0   :  { %vm23_vm0 = vcmask 261120   ;;  %v169_v15 = vmov 0.0   ;;  %vm170_vm1 = vmmov 0   ;;  %vm137_vm2 = vcmask 785408   ;;  %s233_s0 = inlined_call_operand.vmem [shape: f32[16,32], index: 0, kind: input, shape index: {}]   ;;  %s234_s3 = inlined_call_operand.vmem [shape: bf16[32,96], index: 3, kind: input, shape index: {}]   ;;  %s235_s1 = inlined_call_operand.vmem [shape: f32[1,32], index: 1, kind: input, shape index: {}]   ;;  %s236_s2 = inlined_call_operand.vmem [shape: f32[1,32], index: 2, kind: input, shape index: {}]   ;;  %s237_s4 = inlined_call_operand.vmem [shape: f32[1,96], index: 4, kind: input, shape index: {}]   ;;  %s238_s5 = inlined_call_operand.vmem [shape: f32[16,96], index: 5, kind: output, shape index: {}]  }
   0x1   :  { %v21_v0 = vld [vmem:[%s233_s0] sm:$0xff]  ;;  %v22_v1 = vld [vmem:[%s233_s0 + $0x8] sm:$0xff]  ;;  %153 = vmatprep.subr.bf16.mxu0 %v169_v15  ;;  %157 = vmatprep.mubr.msk.bf16.mxu0 %vm170_vm1, %v169_v15 }
   0x2   :  { %v24_v2 = vsel %vm23_vm0, %v21_v0, 0.0  ;;  %v27_v3 = vsel %vm23_vm0, %v22_v1, 0.0  ;;  %v163_v14 = vld [vmem:[%s234_s3] sm:$0xff]   ;;  %v164_v16 = vld [vmem:[%s234_s3 + $0x8] sm:$0xff]  }
   0x3   :  { %25 = vadd.xlane.f32.xlu0 %v24_v2  ;;  %154 = vmatpush3.bf16.msra.mxu0 %v163_v14  ;;  %v144_v25 = vld [vmem:[%s235_s1] ss:$0 sm:$0xff] }
   0x4   :  { %155 = vmatprep.subr.bf16.mxu0 %v169_v15  ;;  %v145_v29 = vld [vmem:[%s236_s2] ss:$0 sm:$0xff] }
   0x5   :  { %v146_v34 = vld [vmem:[%s237_s4] ss:$0 sm:$0xff] }
   0x7   :  { %28 = vadd.xlane.f32.xlu0 %v27_v3  ;;  %156 = vmatpush3.bf16.msra.mxu0 %v164_v16 }
  0x90   :  { %v26_v4 = vpop.xlane.xlu0 %25 }
  0x91   :  { %v31_v5 = vmul.f32 0.03125, %v26_v4 }
  0x93   :  { %v33_v6 = vsub.f32 %v21_v0, %v31_v5 }
  0x94   :  { %v29_v7 = vpop.xlane.xlu0 %28 }
  0x95   :  { %v32_v8 = vmul.f32 0.03125, %v29_v7  ;;  %v35_v9 = vmul.f32 %v33_v6, %v33_v6 }
  0x97   :  { %v34_v10 = vsub.f32 %v22_v1, %v32_v8  ;;  %v37_v11 = vsel %vm23_vm0, %v35_v9, 0.0 }
  0x98   :  { %38 = vadd.xlane.f32.xlu1 %v37_v11 }
  0x99   :  { %v36_v12 = vmul.f32 %v34_v10, %v34_v10 }
  0x9b   :  { %v40_v13 = vsel %vm23_vm0, %v36_v12, 0.0 }
  0x9c   :  { %41 = vadd.xlane.f32.xlu1 %v40_v13 }
 0x125   :  { %v39_v17 = vpop.xlane.xlu1 %38 }
 0x126   :  { %v43_v18 = vmul.f32 0.03125, %v39_v17 }
 0x128   :  { %v45_v19 = vadd.f32 1e-05, %v43_v18 }
 0x129   :  { %v42_v20 = vpop.xlane.xlu1 %41 }
 0x12a   :  { %165 = vrsqrt.f32 %v45_v19  ;;  %v44_v21 = vmul.f32 0.03125, %v42_v20 }
 0x12c   :  { %v46_v22 = vadd.f32 1e-05, %v44_v21 }
 0x12e   :  { %167 = vrsqrt.f32 %v46_v22 }
 0x134   :  { %v166_v23 = vpop.eup %165 }
 0x135   :  { %v49_v24 = vmul.f32 %v166_v23, %v33_v6 }
 0x137   :  { %v58_v28 = vmul.f32 %v144_v25, %v49_v24 }
 0x138   :  { %v168_v26 = vpop.eup %167 }
 0x139   :  { %v50_v27 = vmul.f32 %v168_v26, %v34_v10  ;;  %v67_v31 = vadd.f32 %v145_v29, %v58_v28 }
 0x13b   :  { %v59_v30 = vmul.f32 %v144_v25, %v50_v27 }
 0x13d   :  { %v68_v32 = vadd.f32 %v145_v29, %v59_v30 }
 0x13f   :  { %v69_v33 = vpack.c.bf16 %v68_v32, %v67_v31 }
 0x141   :  { %158 = vmatmul.mubr.msk.bf16.vlgmr.msra.gmra.mrb[0].mxu0 %vm23_vm0, %v69_v33 }
 0x214   :  { %v130_v35 = vpop.f32.mrb[0].mxu0 }
 0x215   :  { %v131_v36 = vadd.f32 %v146_v34, %v130_v35  ;;  %v159_v37 = vpop.f32.mrb[1].mxu0 }
 0x216   :  { %v133_v38 = vpop.f32.mrb[2].mxu0 }
 0x217   :  { %138 = vst.msk [vmem:[%s238_s5] sm:$0xff] %vm137_vm2, %v131_v36  ;;  %v134_v39 = vadd.f32 %v146_v34, %v133_v38  ;;  %v160_v40 = vpop.f32.mrb[3].mxu0 }
 0x219   :  { %139 = vst.msk [vmem:[%s238_s5 + $0x8] sm:$0xff] %vm137_vm2, %v134_v39 }

// kernel: run.18
= control target key start
LH: loop header
LB: loop body
LE: loop exit
PB: predicated region body
PF: predicated region fallthrough
CT: control target
= control target key end

     0   :  { %vm19_vm0 = vcmask 31744   ;;  %v132_v0 = vmov 0.0   ;;  %vm133_vm1 = vmmov 0   ;;  %vm43_vm2 = vcmask 261120   ;;  %s181_s1 = inlined_call_operand.vmem [shape: bf16[32,4], index: 1, kind: input, shape index: {}]   ;;  %s182_s0 = inlined_call_operand.vmem [shape: f32[16,32], index: 0, kind: input, shape index: {}]   ;;  %s183_s2 = inlined_call_operand.vmem [shape: f32[1,4], index: 2, kind: input, shape index: {}]   ;;  %s184_s3 = inlined_call_operand.vmem [shape: f32[16,4], index: 3, kind: output, shape index: {}]  }
   0x1   :  { %120 = vmatprep.subr.bf16.mxu0 %v132_v0  ;;  %v130_v1 = vld [vmem:[%s181_s1] sm:$0xff]   ;;  %124 = vmatprep.mubr.msk.bf16.mxu0 %vm133_vm1, %v132_v0  ;;  %20 = vst.msk [vmem:[#allocation2] sm:$0xff] %vm19_vm0, %v132_v0  ;;  %21 = vst.msk [vmem:[#allocation2 + $0x8] sm:$0xff] %vm19_vm0, %v132_v0  ;;  %v131_v2 = vld [vmem:[%s181_s1 + $0x8] sm:$0xff]  }
   0x2   :  { %121 = vmatpush3.bf16.msra.mxu0 %v130_v1  ;;  %v24_v3 = vld [vmem:[%s182_s0] sm:$0xff]  ;;  %v25_v4 = vld [vmem:[%s182_s0 + $0x8] sm:$0xff] }
   0x3   :  { %122 = vmatprep.subr.bf16.mxu0 %v132_v0  ;;  %v26_v5 = vpack.c.bf16 %v25_v4, %v24_v3  ;;  %v116_v14 = vld [vmem:[%s183_s2] ss:$0 sm:$0xff] }
   0x6   :  { %123 = vmatpush3.bf16.msra.mxu0 %v131_v2 }
   0x8   :  { %v22_v6 = vld [vmem:[#allocation2] sm:$0xff]  ;;  %v23_v8 = vld [vmem:[#allocation2 + $0x8] sm:$0xff] }
   0x9   :  { %125 = vmatmul.mubr.msk.bf16.vlgmr.msra.gmra.mrb[0].mxu0 %vm43_vm2, %v26_v5 }
  0xdc   :  { %v81_v7 = vpop.f32.mrb[0].mxu0 }
  0xdd   :  { %v88_v9 = vadd.f32 %v81_v7, %v22_v6  ;;  %v126_v10 = vpop.f32.mrb[1].mxu0 }
  0xde   :  { %v84_v11 = vpop.f32.mrb[2].mxu0 }
  0xdf   :  { %91 = vst.msk [vmem:[#allocation2] sm:$0xff] %vm19_vm0, %v88_v9  ;;  %v89_v12 = vadd.f32 %v84_v11, %v23_v8  ;;  %v127_v13 = vpop.f32.mrb[3].mxu0 }
  0xe1   :  { %92 = vst.msk [vmem:[#allocation2 + $0x8] sm:$0xff] %vm19_vm0, %v89_v12 }
  0xe6   :  { %v96_v15 = vld [vmem:[#allocation2] sm:$0xff] }
  0xe7   :  { %v105_v16 = vadd.f32 %v116_v14, %v96_v15 }
  0xe8   :  { %v97_v17 = vld [vmem:[#allocation2 + $0x8] sm:$0xff] }
  0xe9   :  { %107 = vst.msk [vmem:[%s184_s3] sm:$0xff] %vm19_vm0, %v105_v16  ;;  %v106_v18 = vadd.f32 %v116_v14, %v97_v17 }
  0xeb   :  { %108 = vst.msk [vmem:[%s184_s3 + $0x8] sm:$0xff] %vm19_vm0, %v106_v18 }

// kernel: run.27
= control target key start
LH: loop header
LB: loop body
LE: loop exit
PB: predicated region body
PF: predicated region fallthrough
CT: control target
= control target key end

     0   :  { %v361_v1 = vmov 0.0   ;;  %vm88_vm0 = vcmask 261120   ;;  %s470_s0 = inlined_call_operand.vmem [shape: f32[16,32], index: 0, kind: input, shape index: {}]   ;;  %s471_s1 = inlined_call_operand.vmem [shape: bf16[128,32], index: 1, kind: input, shape index: {}]   ;;  %s472_s2 = inlined_call_operand.vmem [shape: s32[16,1], index: 2, kind: input, shape index: {}]   ;;  %s473_s3 = inlined_call_operand.hbm [shape: f32[16,128], index: 3, kind: output, shape index: {0}]   ;;  %s474_s4 = inlined_call_operand.vmem [shape: f32[16,1], index: 4, kind: output, shape index: {1}]  }
   0x1   :  { %v317_v0 = vld [vmem:[%s471_s1] sm:$0xff]   ;;  %288 = vmatprep.subr.bf16.mxu0 %v361_v1  ;;  %v318_v3 = vld [vmem:[%s471_s1 + $0x8] sm:$0xff]  }
   0x2   :  { %v93_v2 = vsel %vm88_vm0, %v317_v0, 0  ;;  %v96_v4 = vsel %vm88_vm0, %v318_v3, 0 }
   0x3   :  { %289 = vmatpush3.bf16.xpose.msra.mxu0 %v93_v2 }
   0x4   :  { %290 = vmatprep.subr.bf16.mxu0 %v361_v1 }
   0x5   :  { %10 = vsyncpa [#allocation6], 0  ;;  %vm362_vm1 = vmmov 0   ;;  %v319_v5 = vld [vmem:[%s471_s1 + $0x10] sm:$0xff]   ;;  %v320_v7 = vld [vmem:[%s471_s1 + $0x18] sm:$0xff]   ;;  %v363_v20 = vmov 0   ;;  %v205_v34 = vlaneseq }
   0x6   :  { %304 = vmatprep.mubr.msk.bf16.mxu0 %vm362_vm1, %v361_v1  ;;  %v99_v6 = vsel %vm88_vm0, %v319_v5, 0  ;;  %v102_v8 = vsel %vm88_vm0, %v320_v7, 0  ;;  %v321_v9 = vld [vmem:[%s471_s1 + $0x20] sm:$0xff]   ;;  %v322_v11 = vld [vmem:[%s471_s1 + $0x28] sm:$0xff]   ;;  %v323_v13 = vld [vmem:[%s471_s1 + $0x30] sm:$0xff]   ;;  %316 = vset.pattern.permute.xlu0 %v363_v20  ;;  %vm22_vm2 = vcmask 7168  }
   0x7   :  { %v105_v10 = vsel %vm88_vm0, %v321_v9, 0  ;;  %v108_v12 = vsel %vm88_vm0, %v322_v11, 0  ;;  %v111_v14 = vsel %vm88_vm0, %v323_v13, 0  ;;  %v324_v15 = vld [vmem:[%s471_s1 + $0x38] sm:$0xff]   ;;  %v29_v17 = vld [vmem:[%s470_s0] sm:$0xff]  ;;  %v30_v18 = vld [vmem:[%s470_s0 + $0x8] sm:$0xff]  ;;  %315 = vset.pattern.permute.xlu1 %v363_v20 }
   0x8   :  { %v114_v16 = vsel %vm88_vm0, %v324_v15, 0  ;;  %v31_v19 = vpack.c.bf16 %v30_v18, %v29_v17  ;;  %v364_v25 = vmov -1e+30   ;;  %25 = vst.msk [vmem:[#allocation3] sm:$0xff] %vm22_vm2, %v361_v1  ;;  %26 = vst.msk [vmem:[#allocation3 + $0x8] sm:$0xff] %vm22_vm2, %v361_v1  ;;  %v211_v26 = vld [vmem:[%s472_s2] sm:$0xff] }
   0x9   :  { %23 = vst.msk [vmem:[#allocation2] sm:$0xff] %vm22_vm2, %v364_v25  ;;  %24 = vst.msk [vmem:[#allocation2 + $0x8] sm:$0xff] %vm22_vm2, %v364_v25  ;;  %v212_v36 = vld [vmem:[%s472_s2 + $0x8] sm:$0xff]  ;;  %v206_v37 = vand.u32 127, %v205_v34  ;;  %s365_s2 = smov [#allocation5]  }
   0xa   :  { %27 = vst.msk [vmem:[#allocation4] sm:$0xff] %vm22_vm2, %v361_v1  ;;  %28 = vst.msk [vmem:[#allocation4 + $0x8] sm:$0xff] %vm22_vm2, %v361_v1  ;;  %s255_s11 = sshll.u32 %s365_s2, 4  ;;  %s256_s11 = int_to_ptr.vmem [resolvable:$true] %s255_s11 }
   0xb   :  { %291 = vmatpush3.bf16.xpose.msra.mxu0 %v96_v4  ;;  %s337_s12 = scalar_lea.vmem %s256_s11, 256  ;;  %p342_p1 = scmp.lt.s32.totalorder %s256_s11, %s256_s11 }
   0xc   :  { %292 = vmatprep.subr.bf16.mxu0 %v361_v1  ;;  %p338_p0 = scmp.ne.s32.totalorder %s256_s11, %s337_s12  ;;  %p343_p2 = scmp.lt.s32.totalorder %s337_s12, %s337_s12 }
   0xe   :  { %p344_p3 = por %p343_p2, %p342_p1 }
  0x10   :  { %v159_v27 = vld [vmem:[#allocation2] sm:$0xff]  ;;  %v160_v30 = vld [vmem:[#allocation2 + $0x8] sm:$0xff]  ;;  %p345_p4 = pnand %p344_p3, %p338_p0 }
  0x11   :  { %v209_v50 = vld [vmem:[#allocation4] sm:$0xff] }
  0x13   :  { %293 = vmatpush3.bf16.xpose.msra.mxu0 %v99_v6 }
  0x14   :  { %294 = vmatprep.subr.bf16.mxu0 %v361_v1 }
  0x1b   :  { %295 = vmatpush3.bf16.xpose.msra.mxu0 %v102_v8 }
  0x1c   :  { %296 = vmatprep.subr.bf16.mxu0 %v361_v1 }
  0x23   :  { %297 = vmatpush3.bf16.xpose.msra.mxu0 %v105_v10 }
  0x24   :  { %298 = vmatprep.subr.bf16.mxu0 %v361_v1 }
  0x2b   :  { %299 = vmatpush3.bf16.xpose.msra.mxu0 %v108_v12 }
  0x2c   :  { %300 = vmatprep.subr.bf16.mxu0 %v361_v1 }
  0x33   :  { %301 = vmatpush3.bf16.xpose.msra.mxu0 %v111_v14 }
  0x34   :  { %302 = vmatprep.subr.bf16.mxu0 %v361_v1 }
  0x3b   :  { %303 = vmatpush3.bf16.xpose.msra.mxu0 %v114_v16 }
  0x42   :  { %305 = vmatmul.mubr.msk.bf16.vlgmr.msra.gmra.mrb[0].mxu0 %vm88_vm0, %v31_v19 }
 0x115   :  { %v150_v21 = vpop.f32.mrb[0].mxu0 }
 0x116   :  { %157 = vst [vmem:[#allocation5] sm:$0xff] %v150_v21  ;;  %161 = vmax.xlane.f32.xlu0 %v150_v21  ;;  %v306_v22 = vpop.f32.mrb[1].mxu0 }
 0x117   :  { %v153_v23 = vpop.f32.mrb[2].mxu0 }
 0x118   :  { %158 = vst [vmem:[#allocation5 + $0x8] sm:$0xff] %v153_v23  ;;  %v307_v24 = vpop.f32.mrb[3].mxu0 }
 0x11a   :  { %163 = vmax.xlane.f32.xlu0 %v153_v23 }
 0x130   :  { %214 = vperm.xlu0 %316, %v211_v26  }
 0x1a3   :  { %v162_v28 = vpop.xlane.xlu0 %161 }
 0x1a4   :  { %v165_v29 = vmax.f32 %v159_v27, %v162_v28 }
 0x1a6   :  { %v167_v31 = vsub.f32 %v159_v27, %v165_v29  ;;  %202 = vst.msk [vmem:[#allocation2] sm:$0xff] %vm22_vm2, %v165_v29  ;;  %179 = vperm.xlu1 %315, %v165_v29  }
 0x1a7   :  { %v164_v32 = vpop.xlane.xlu0 %163 }
 0x1a8   :  { %v166_v33 = vmax.f32 %v160_v30, %v164_v32 }
 0x1aa   :  { %v168_v35 = vsub.f32 %v160_v30, %v166_v33  ;;  %203 = vst.msk [vmem:[#allocation2 + $0x8] sm:$0xff] %vm22_vm2, %v166_v33  ;;  %184 = vperm.xlu1 %315, %v166_v33  }
 0x1ae   :  { %217 = vperm.xlu1 %315, %v212_v36  }
 0x1af   :  { %v215_v38 = vpop.permute.xlu0 %214 }
 0x1b0   :  { %vm219_vm3 = vcmp.eq.s32.totalorder %v206_v37, %v215_v38 }
 0x1b1   :  { %v221_v39 = vsel %vm219_vm3, %v150_v21, 0.0 }
 0x1b2   :  { %223 = vadd.xlane.f32.xlu0 %v221_v39 }
 0x225   :  { %v180_v40 = vpop.permute.xlu1 %179 }
 0x226   :  { %v187_v41 = vsub.f32 %v150_v21, %v180_v40 }
 0x228   :  { %v189_v42 = vmul.f32 1.442695, %v187_v41 }
 0x229   :  { %v185_v43 = vpop.permute.xlu1 %184 }
 0x22a   :  { %325 = vpow2.f32 %v189_v42  ;;  %v188_v44 = vsub.f32 %v153_v23, %v185_v43 }
 0x22c   :  { %v191_v45 = vmul.f32 1.442695, %v188_v44 }
 0x22d   :  { %v218_v47 = vpop.permute.xlu1 %217 }
 0x22e   :  { %327 = vpow2.f32 %v191_v45  ;;  %vm220_vm4 = vcmp.eq.s32.totalorder %v206_v37, %v218_v47 }
 0x22f   :  { %v222_v49 = vsel %vm220_vm4, %v153_v23, 0.0 }
 0x234   :  { %v326_v46 = vpop.eup %325 }
 0x235   :  { %193 = vadd.xlane.f32.xlu1 %v326_v46 }
 0x238   :  { %v328_v48 = vpop.eup %327 }
 0x239   :  { %195 = vadd.xlane.f32.xlu1 %v328_v48 }
 0x23d   :  { %225 = vadd.xlane.f32.xlu1 %v222_v49 }
 0x23f   :  { %v224_v51 = vpop.xlane.xlu0 %223 }
 0x240   :  { %v227_v52 = vadd.f32 %v224_v51, %v209_v50 }
 0x242   :  { %229 = vst.msk [vmem:[#allocation4] sm:$0xff] %vm22_vm2, %v227_v52 }
 0x243   :  { %348 = shalt.err (!%p345_p4)
}
 0x244   :  { %s349_s15 = scalar_lea.hbm %s473_s3, 256 }
 0x245   :  { %p350_p5 = scmp.ne.s32.totalorder %s473_s3, %s349_s15  ;;  %p353_p6 = scmp.lt.u32.totalorder %s349_s15, %s473_s3 }
 0x247   :  { %p355_p7 = pnand %p353_p6, %p350_p5 }
 0x249   :  { %358 = shalt.err (!%p355_p7)
}
 0x24a   :  { %s366_s20 = smov 128   ;;  %s367_s21 = smov 8   ;;  %v169_v53 = vmul.f32 1.442695, %v167_v31  ;;  %v171_v54 = vmul.f32 1.442695, %v168_v35 }
 0x24b   :  { %261 = dma.vmem_to_hbm [thread:$0]  %s256_s11, 256, %s473_s3, [#allocation6], %s366_s20, %s366_s20, %s367_s21   ;;  %v173_v56 = vld [vmem:[#allocation3] sm:$0xff]  ;;  %v174_v60 = vld [vmem:[#allocation3 + $0x8] sm:$0xff]  ;;  %v210_v1 = vld [vmem:[#allocation4 + $0x8] sm:$0xff] }
 0x24c   :  { %329 = vpow2.f32 %v169_v53  ;;  %v234_v8 = vld [vmem:[#allocation2] sm:$0xff]  ;;  %v235_v14 = vld [vmem:[#allocation2 + $0x8] sm:$0xff] }
 0x24d   :  { %331 = vpow2.f32 %v171_v54  ;;  %v244_v11 = vld [vmem:[#allocation4] sm:$0xff] }
 0x256   :  { %v330_v55 = vpop.eup %329 }
 0x257   :  { %v175_v57 = vmul.f32 %v330_v55, %v173_v56  ;;  %v332_v58 = vpop.eup %331 }
 0x258   :  { %v176_v62 = vmul.f32 %v332_v58, %v174_v60 }
 0x2c2   :  { %v194_v59 = vpop.xlane.xlu1 %193 }
 0x2c3   :  { %v197_v61 = vadd.f32 %v194_v59, %v175_v57 }
 0x2c5   :  { %200 = vst.msk [vmem:[#allocation3] sm:$0xff] %vm22_vm2, %v197_v61 }
 0x2c6   :  { %v196_v63 = vpop.xlane.xlu1 %195 }
 0x2c7   :  { %v198_v0 = vadd.f32 %v196_v63, %v176_v62 }
 0x2c9   :  { %201 = vst.msk [vmem:[#allocation3 + $0x8] sm:$0xff] %vm22_vm2, %v198_v0 }
 0x2ca   :  { %v226_v2 = vpop.xlane.xlu1 %225 }
 0x2cb   :  { %v228_v3 = vadd.f32 %v226_v2, %v210_v1 }
 0x2cc   :  { %v236_v4 = vld [vmem:[#allocation3] sm:$0xff] }
 0x2cd   :  { %333 = vlog2.f32 %v236_v4  ;;  %230 = vst.msk [vmem:[#allocation4 + $0x8] sm:$0xff] %vm22_vm2, %v228_v3 }
 0x2d0   :  { %v237_v5 = vld [vmem:[#allocation3 + $0x8] sm:$0xff] }
 0x2d1   :  { %335 = vlog2.f32 %v237_v5 }
 0x2d4   :  { %v245_v16 = vld [vmem:[#allocation4 + $0x8] sm:$0xff] }
 0x2d7   :  { %v334_v6 = vpop.eup %333 }
 0x2d8   :  { %v239_v7 = vmul.f32 0.6931472, %v334_v6 }
 0x2da   :  { %v242_v9 = vadd.f32 %v239_v7, %v234_v8 }
 0x2db   :  { %v336_v10 = vpop.eup %335 }
 0x2dc   :  { %v246_v12 = vsub.f32 %v242_v9, %v244_v11  ;;  %v241_v13 = vmul.f32 0.6931472, %v336_v10 }
 0x2de   :  { %248 = vst.msk [vmem:[%s474_s4] sm:$0xff] %vm22_vm2, %v246_v12  ;;  %v243_v15 = vadd.f32 %v241_v13, %v235_v14 }
 0x2e0   :  { %v247_v17 = vsub.f32 %v243_v15, %v245_v16 }
 0x2e2   :  { %249 = vst.msk [vmem:[%s474_s4 + $0x8] sm:$0xff] %vm22_vm2, %v247_v17 }
 0x2e3   :  { %359 = dma.done.wait [#allocation6], 256  }
 0x2e4   :  { %360 = vsyncadd [#allocation6], 4294967040 }
 0x2e5   :  { %269 = vsyncpa [#allocation6], 1 }

// kernel: run.19
= control target key start
LH: loop header
LB: loop body
LE: loop exit
PB: predicated region body
PF: predicated region fallthrough
CT: control target
= control target key end

     0   :  { %s1289_s30 = smov 0   ;;  %s1291_s10 = smov 0   ;;  %s1416_s0 = inlined_call_operand.vmem [shape: f32[16,32], index: 0, kind: input, shape index: {}]   ;;  %s1417_s1 = inlined_call_operand.vmem [shape: f32[16,4], index: 1, kind: input, shape index: {}]   ;;  %s1418_s2 = inlined_call_operand.vmem [shape: f32[16,32], index: 2, kind: input, shape index: {}]   ;;  %s1419_s3 = inlined_call_operand.vmem [shape: bf16[4,32,128], index: 3, kind: input, shape index: {}]   ;;  %s1420_s4 = inlined_call_operand.vmem [shape: f32[4,1,128], index: 4, kind: input, shape index: {}]   ;;  %s1421_s5 = inlined_call_operand.vmem [shape: bf16[4,32,128], index: 5, kind: input, shape index: {}]   ;;  %s1422_s6 = inlined_call_operand.vmem [shape: f32[4,1,128], index: 6, kind: input, shape index: {}]   ;;  %s1423_s7 = inlined_call_operand.vmem [shape: bf16[4,128,32], index: 7, kind: input, shape index: {}]   ;;  %s1424_s8 = inlined_call_operand.vmem [shape: f32[4,1,32], index: 8, kind: input, shape index: {}]   ;;  %s1425_s9 = inlined_call_operand.vmem [shape: f32[16,32], index: 9, kind: output, shape index: {}]  }
   0x1   :  { %s1293_s11 = smov 0  }
   0x2 LB: > { %s34_s12 = sadd.s32 1, %s1231_s10  ;;  %p1079_p0 = scmp.ge.s32.totalorder %s1235_s11, 1  ;;  %s1235_s11 = sphi %s1293_s11, %s19_s11   ;;  %s1231_s10 = sphi %s1291_s10, %s1430_s10   ;;  %s1227_s30 = sphi %s1289_s30, %s1429_s30  }
   0x3   : > { %p36_p1 = scmp.ge.s32.totalorder %s34_s12, 4  ;;  %p410_p2 = scmp.lt.s32.totalorder %s1235_s11, 5 }
   0x5   : > { %s1432_s12 = smov (%p36_p1, %s34_s12), 0  ;;  %p411_p3 = pnand %p1079_p0, %p410_p2 }
   0x6   : > { %1426 = sst [smem:[#allocation4_spill]] %s1432_s12  ;;  %p514_p4 = scmp.lt.s32.totalorder (!%p411_p3), %s1227_s30, 3 }
   0x7   : > { %414 = sbr.rel (%p411_p3) target bundleno = 526 (0x20e), region = 56  ;;  %p562_p5 = scmp.eq.s32.totalorder (!%p411_p3), %s1227_s30, 0 }
   0xe   : > { %s1312_s13 = scalar_select %p514_p4, %s1227_s30, 3 }
   0xf   : > { %567 = sbr.rel (!%p562_p5) target bundleno = 22 (0x16), region = 60  ;;  %v568_v0 = vld [vmem:[%s1418_s2] sm:$0xff] (%p562_p5)  ;;  %vm570_vm0 = vcmask (%p562_p5), 261120   ;;  %v569_v1 = vld [vmem:[%s1418_s2 + $0x8] sm:$0xff] (%p562_p5) }
  0x10   : > { %s1111_s14 = sshll.u32 %s1312_s13, 4  ;;  %s541_s26 = scalar_lea.vmem %s1422_s6, %s1312_s13  ;;  %571 = vst.msk [vmem:[#allocation2] sm:$0xff] (%p562_p5), %vm570_vm0, %v568_v0  ;;  %572 = vst.msk [vmem:[#allocation2 + $0x8] sm:$0xff] (%p562_p5), %vm570_vm0, %v569_v1 }
  0x11   : > { %s521_s20 = scalar_lea.vmem %s1419_s3, %s1111_s14  ;;  %s1325_s23 = scalar_lea.vmem %s1421_s5, %s1111_s14 }
  0x12   : > { %s1113_s27 = sshll.u32 %s1312_s13, 6  ;;  %s554_s18 = scalar_lea.vmem %s1424_s8, %s1312_s13 }
  0x13   : > { %s1335_s12 = scalar_lea.vmem %s1423_s7, %s1113_s27 }
  0x16 PF: > { %v1193_v2 = vld [vmem:[%s521_s20] sm:$0xff]   ;;  %v1237_v3 = vmov 0.0   ;;  %v1194_v4 = vld [vmem:[%s521_s20 + $0x8] sm:$0xff]   ;;  %vm1238_vm1 = vmmov 0   ;;  %vm576_vm2 = vcmask 261120   ;;  %v1199_v12 = vld [vmem:[%s1335_s12 + $0x10] sm:$0xff]   ;;  %v847_v18 = vlaneseq  ;;  %s1427_s16 = scalar_lea.vmem %s1420_s4, %s1312_s13 }
  0x17   : > { %1131 = vmatprep.subr.bf16.mxu1 %v1237_v3  ;;  %1147 = vmatprep.subr.bf16.mxu0 %v1237_v3  ;;  %v579_v5 = vld [vmem:[%s1416_s0] sm:$0xff]  ;;  %v580_v6 = vld [vmem:[%s1416_s0 + $0x8] sm:$0xff]  ;;  %577 = vst.msk [vmem:[#allocation3] sm:$0xff] %vm576_vm2, %v1237_v3  ;;  %578 = vst.msk [vmem:[#allocation3 + $0x8] sm:$0xff] %vm576_vm2, %v1237_v3  ;;  %v849_v19 = vstv %s1227_s30  ;;  %vm853_vm3 = vcmask 31744   ;;  %p879_p6 = scmp.eq.s32.totalorder %s1227_s30, 3 }
  0x18   : > { %1132 = vmatpush3.bf16.msra.mxu1 %v1193_v2  ;;  %1135 = vmatprep.mubr.msk.bf16.mxu1 %vm1238_vm1, %v1237_v3  ;;  %v1195_v7 = vld [vmem:[%s1325_s23] sm:$0xff]   ;;  %v581_v8 = vpack.c.bf16 %v580_v6, %v579_v5  ;;  %v1196_v9 = vld [vmem:[%s1325_s23 + $0x8] sm:$0xff]   ;;  %v1200_v13 = vld [vmem:[%s1335_s12 + $0x18] sm:$0xff]   ;;  %v848_v21 = vand.u32 127, %v847_v18 }
  0x19   : > { %1133 = vmatprep.subr.bf16.mxu1 %v1237_v3  ;;  %1163 = vmatprep.mubr.msk.bf16.mxu0 %vm1238_vm1, %v1237_v3  ;;  %v1197_v10 = vld [vmem:[%s1335_s12] sm:$0xff]   ;;  %v1198_v11 = vld [vmem:[%s1335_s12 + $0x8] sm:$0xff]   ;;  %v1203_v16 = vld [vmem:[%s1335_s12 + $0x30] sm:$0xff]  }
  0x1a   : > { %1148 = vmatpush3.bf16.msra.mxu0 %v1197_v10  ;;  %v1201_v14 = vld [vmem:[%s1335_s12 + $0x20] sm:$0xff]   ;;  %v1202_v15 = vld [vmem:[%s1335_s12 + $0x28] sm:$0xff]   ;;  %v1204_v17 = vld [vmem:[%s1335_s12 + $0x38] sm:$0xff]   ;;  %vm850_vm4 = vcmp.eq.s32.totalorder %v848_v21, %v849_v19 }
  0x1b   : > { %1149 = vmatprep.subr.bf16.mxu0 %v1237_v3  ;;  %v845_v20 = vld [vmem:[%s1417_s1] sm:$0xff]  ;;  %v846_v22 = vld [vmem:[%s1417_s1 + $0x8] sm:$0xff] }
  0x1c   : > { %1134 = vmatpush3.bf16.msra.mxu1 %v1194_v4  ;;  %v851_v23 = vsel %vm850_vm4, %v845_v20, 0.0  ;;  %v852_v24 = vsel %vm850_vm4, %v846_v22, 0.0  ;;  %v1091_v31 = vld [vmem:[%s541_s26] ss:$0 sm:$0xff] }
  0x1d   : > { %1139 = vmatprep.subr.bf16.mxu1 %v1237_v3  ;;  %v854_v25 = vsel %vm853_vm3, %v851_v23, 0.0  ;;  %v857_v26 = vsel %vm853_vm3, %v852_v24, 0.0  ;;  %v1087_v44 = vld [vmem:[%s1427_s16] ss:$0 sm:$0xff] }
  0x1e   : > { %1150 = vmatpush3.bf16.msra.mxu0 %v1198_v11  ;;  %855 = vadd.xlane.f32.xlu0 %v854_v25  ;;  %v731_v54 = vld [vmem:[#allocation3] sm:$0xff]  ;;  %v732_v56 = vld [vmem:[#allocation3 + $0x8] sm:$0xff]  ;;  %v1105_v63 = vld [vmem:[%s554_s18] ss:$0 sm:$0xff] }
  0x1f   : > { %1136 = vmatmul.mubr.msk.bf16.vlgmr.msra.gmra.mrb[0].mxu1 %vm576_vm2, %v581_v8  ;;  %1151 = vmatprep.subr.bf16.mxu0 %v1237_v3  ;;  %v860_v2 = vld [vmem:[#allocation2] sm:$0xff] }
  0x20   : > { %1140 = vmatpush3.bf16.msra.mxu1 %v1195_v7  ;;  %1143 = vmatprep.mubr.msk.bf16.mxu1 %vm1238_vm1, %v1237_v3  ;;  %v861_v7 = vld [vmem:[#allocation2 + $0x8] sm:$0xff] }
  0x21   : > { %1141 = vmatprep.subr.bf16.mxu1 %v1237_v3 }
  0x22   : > { %1152 = vmatpush3.bf16.msra.mxu0 %v1199_v12  ;;  %858 = vadd.xlane.f32.xlu0 %v857_v26 }
  0x23   : > { %1153 = vmatprep.subr.bf16.mxu0 %v1237_v3 }
  0x24   : > { %1142 = vmatpush3.bf16.msra.mxu1 %v1196_v9 }
  0x26   : > { %1154 = vmatpush3.bf16.msra.mxu0 %v1200_v13 }
  0x27   : > { %1144 = vmatmul.mubr.msk.bf16.vlgmr.msra.gmra.mrb[4].mxu1 %vm576_vm2, %v581_v8  ;;  %1155 = vmatprep.subr.bf16.mxu0 %v1237_v3 }
  0x2a   : > { %1156 = vmatpush3.bf16.msra.mxu0 %v1201_v14 }
  0x2b   : > { %1157 = vmatprep.subr.bf16.mxu0 %v1237_v3 }
  0x2e   : > { %1158 = vmatpush3.bf16.msra.mxu0 %v1202_v15 }
  0x2f   : > { %1159 = vmatprep.subr.bf16.mxu0 %v1237_v3 }
  0x32   : > { %1160 = vmatpush3.bf16.msra.mxu0 %v1203_v16 }
  0x33   : > { %1161 = vmatprep.subr.bf16.mxu0 %v1237_v3 }
  0x36   : > { %1162 = vmatpush3.bf16.msra.mxu0 %v1204_v17 }
  0xab   : > { %v856_v62 = vpop.xlane.xlu0 %855 }
  0xaf   : > { %v859_v3 = vpop.xlane.xlu0 %858 }
  0xf2   : > { %v643_v27 = vpop.f32.mrb[0].mxu1 }
  0xf3   : > { %v1137_v28 = vpop.f32.mrb[1].mxu1  ;;  %v644_v46 = vadd.f32 %v1087_v44, %v643_v27 }
  0xf4   : > { %v646_v29 = vpop.f32.mrb[2].mxu1 }
  0xf5   : > { %v1138_v30 = vpop.f32.mrb[3].mxu1  ;;  %v647_v49 = vadd.f32 %v1087_v44, %v646_v29 }
  0xfa   : > { %v707_v32 = vpop.f32.mrb[4].mxu1 }
  0xfb   : > { %v708_v33 = vadd.f32 %v1091_v31, %v707_v32  ;;  %v1145_v34 = vpop.f32.mrb[5].mxu1 }
  0xfc   : > { %v710_v35 = vpop.f32.mrb[6].mxu1 }
  0xfd   : > { %v1095_v36 = vmul.f32 -1.442695, %v708_v33  ;;  %v711_v37 = vadd.f32 %v1091_v31, %v710_v35  ;;  %v1146_v38 = vpop.f32.mrb[7].mxu1 }
  0xff   : > { %1205 = vpow2.f32 %v1095_v36  ;;  %v1096_v39 = vmul.f32 -1.442695, %v711_v37 }
 0x101   : > { %1207 = vpow2.f32 %v1096_v39 }
 0x109   : > { %v1206_v40 = vpop.eup %1205 }
 0x10a   : > { %v720_v41 = vadd.f32 1.0, %v1206_v40 }
 0x10b   : > { %v1208_v42 = vpop.eup %1207 }
 0x10c   : > { %1209 = vrcp.f32 %v720_v41  ;;  %v721_v43 = vadd.f32 1.0, %v1208_v42 }
 0x10e   : > { %1211 = vrcp.f32 %v721_v43 }
 0x116   : > { %v1210_v45 = vpop.eup %1209 }
 0x117   : > { %v726_v47 = vmul.f32 %v1210_v45, %v708_v33 }
 0x118   : > { %v1212_v48 = vpop.eup %1211 }
 0x119   : > { %v728_v50 = vmul.f32 %v726_v47, %v644_v46  ;;  %v727_v51 = vmul.f32 %v1212_v48, %v711_v37 }
 0x11b   : > { %v729_v52 = vmul.f32 %v727_v51, %v647_v49 }
 0x11d   : > { %v730_v53 = vpack.c.bf16 %v729_v52, %v728_v50 }
 0x11f   : > { %1164 = vmatmul.mubr.bf16.vlgmr.msra.gmra.mrb[0].mxu0 %v730_v53 }
 0x1f2   : > { %v831_v55 = vpop.f32.mrb[0].mxu0 }
 0x1f3   : > { %v838_v57 = vadd.f32 %v831_v55, %v731_v54  ;;  %v1165_v58 = vpop.f32.mrb[1].mxu0 }
 0x1f4   : > { %v834_v59 = vpop.f32.mrb[2].mxu0 }
 0x1f5   : > { %840 = vst.msk [vmem:[#allocation3] sm:$0xff] %vm576_vm2, %v838_v57  ;;  %v839_v60 = vadd.f32 %v834_v59, %v732_v56  ;;  %v1166_v61 = vpop.f32.mrb[3].mxu0 }
 0x1f7   : > { %841 = vst.msk [vmem:[#allocation3 + $0x8] sm:$0xff] %vm576_vm2, %v839_v60 }
 0x1fc   : > { %v862_v0 = vld [vmem:[#allocation3] sm:$0xff] }
 0x1fd   : > { %v871_v1 = vadd.f32 %v1105_v63, %v862_v0 }
 0x1fe   : > { %v863_v4 = vld [vmem:[#allocation3 + $0x8] sm:$0xff] }
 0x1ff   : > { %v873_v5 = vmul.f32 %v871_v1, %v856_v62  ;;  %v872_v6 = vadd.f32 %v1105_v63, %v863_v4  ;;  %883 = sbr.rel (!%p879_p6) target bundleno = 526 (0x20e), region = 72 }
 0x201   : > { %v875_v8 = vadd.f32 %v873_v5, %v860_v2  ;;  %v874_v9 = vmul.f32 %v872_v6, %v859_v3 }
 0x203   : > { %877 = vst.msk [vmem:[#allocation2] sm:$0xff] %vm576_vm2, %v875_v8  ;;  %v876_v10 = vadd.f32 %v874_v9, %v861_v7 }
 0x205   : > { %878 = vst.msk [vmem:[#allocation2 + $0x8] sm:$0xff] %vm576_vm2, %v876_v10 }
 0x20a   : > { %v884_v11 = vld [vmem:[#allocation2] sm:$0xff] }
 0x20b   : > { %886 = vst.msk [vmem:[%s1425_s9] sm:$0xff] %vm576_vm2, %v884_v11 }
 0x20c   : > { %v885_v12 = vld [vmem:[#allocation2 + $0x8] sm:$0xff] }
 0x20d   : > { %887 = vst.msk [vmem:[%s1425_s9 + $0x8] sm:$0xff] %vm576_vm2, %v885_v12 }
 0x20e PF: > { %s19_s11 = sadd.s32 1, %s1235_s11   ;;  %s1428_s22 = sld [smem:[#allocation4_spill]] }
 0x20f   : > { %p16_p7 = scmp.ge.s32.totalorder %s19_s11, 6   ;;  %s1429_s30 = smov %s1231_s10 }
 0x211   :  { %18 = sbr.rel (!%p16_p7) target bundleno = 2 (0x2), region = 126 }
 0x214   : > { %s1430_s10 = smov %s1428_s22 }

</bundles_post_ra>
